<compile_context>
chip_gen: v7x
topology: tpu7x:2x2x1
jax: 0.10.0
libtpu: 0.0.40
codegen_flags: <defaults>
</compile_context>

<pallas_src>
import jax
import jax.numpy as jnp
from jax import lax
from jax.experimental import pallas as pl
from jax.experimental.pallas import tpu as pltpu


def mlp_kernel(x_ref,
               w1_ref, b1_ref,
               w2_ref, b2_ref,
               w3_ref, b3_ref,
               w4t_ref, b4_ref,
               o_ref):
    # x tile: (bt, D). Cast to bf16 only at the MXU inputs; accumulation,
    # bias adds and ReLUs stay in f32.
    x = x_ref[...].astype(jnp.bfloat16)

    # Linear(D,128) with eval-mode BatchNorm1d(128) pre-folded, + ReLU.
    h = jnp.dot(x, w1_ref[...], preferred_element_type=jnp.float32) + b1_ref[...]
    h = jnp.maximum(h, 0.0)
    # TODO(synk): Dropout(0.3) is identity in inference mode; training-mode RNG masking not implemented.

    # Linear(128,64) with eval-mode BatchNorm1d(64) pre-folded, + ReLU.
    h = jnp.dot(h.astype(jnp.bfloat16), w2_ref[...],
                preferred_element_type=jnp.float32) + b2_ref[...]
    h = jnp.maximum(h, 0.0)

    # Linear(64,32) + ReLU.
    h = jnp.dot(h.astype(jnp.bfloat16), w3_ref[...],
                preferred_element_type=jnp.float32) + b3_ref[...]
    h = jnp.maximum(h, 0.0)

    # Linear(32,1), computed as (1,32) . (bt,32)^T -> (1, bt) so the output
    # block is lane-dense (unmasked stores) instead of a (bt, 1) column.
    y = lax.dot_general(w4t_ref[...], h.astype(jnp.bfloat16),
                        (((1,), (1,)), ((), ())),
                        preferred_element_type=jnp.float32)     # (1, bt)
    o_ref[...] = y + b4_ref[0, 0]                               # b4 scalar from SMEM


def _round_up(n, m):
    return ((n + m - 1) // m) * m


def fold_params(params):
    """One-time parameter prep (hoisted out of the per-call wrapper).

    Folds eval-mode BatchNorm (scale s, shift t) into the preceding Linear:
      (xW + b) * s + t == x(W*s) + (b*s + t)
    pre-transposes w4, casts matmul weights to bf16 (biases stay f32), and
    keeps b4 as an f32 (1,1) scalar destined for SMEM.
    """
    w1 = (params["w1"] * params["s1"]).astype(jnp.bfloat16)
    b1 = (params["b1"] * params["s1"] + params["t1"]).astype(jnp.float32)
    w2 = (params["w2"] * params["s2"]).astype(jnp.bfloat16)
    b2 = (params["b2"] * params["s2"] + params["t2"]).astype(jnp.float32)
    w3 = params["w3"].astype(jnp.bfloat16)
    b3 = params["b3"].astype(jnp.float32)
    w4t = params["w4"].T.astype(jnp.bfloat16)        # (1, 32) row vector
    b4 = params["b4"].astype(jnp.float32)             # (1, 1)
    return dict(w1=w1, b1=b1, w2=w2, b2=b2, w3=w3, b3=b3, w4t=w4t, b4=b4)


def custom_nn_forward(x, folded, *, batch_tile=4096):
    """x: (N, input_dim) float32 -> (N, 1) float32 (eval-mode forward).

    `folded` must come from fold_params() (called once, not per forward).
    """
    N, D = x.shape

    # Batch tile: multiple of 128, capped so the grid has >= 2 steps whenever
    # N > 128 (lets the "parallel" batch axis shard across both v7x TCs).
    bt = min(batch_tile, max(128, _round_up(pl.cdiv(N, 2), 128)))
    grid = (pl.cdiv(N, bt),)   # ragged tail handled by Pallas (no wrapper pad)

    full = lambda a: pl.BlockSpec(a.shape, lambda i: (0, 0))

    out_t = pl.pallas_call(
        mlp_kernel,
        out_shape=jax.ShapeDtypeStruct((1, N), jnp.float32),
        grid_spec=pltpu.PrefetchScalarGridSpec(
            num_scalar_prefetch=0,
            grid=grid,
            in_specs=[
                pl.BlockSpec((bt, D), lambda i: (i, 0)),            # x batch tile
                full(folded["w1"]), full(folded["b1"]),
                full(folded["w2"]), full(folded["b2"]),
                full(folded["w3"]), full(folded["b3"]),
                full(folded["w4t"]),
                pl.BlockSpec(memory_space=pltpu.MemorySpace.SMEM),  # b4 scalar
            ],
            out_specs=pl.BlockSpec((1, bt), lambda i: (0, i)),
        ),
        compiler_params=pltpu.CompilerParams(
            dimension_semantics=("parallel",)),
    )(x, folded["w1"], folded["b1"], folded["w2"], folded["b2"],
      folded["w3"], folded["b3"], folded["w4t"], folded["b4"])

    # (1, N) row-major -> (N, 1).
    return out_t.reshape(N, 1)


def init_params(key, input_dim):
    """Deterministic init matching PyTorch default shapes.

    Linear: weight (out, in) uniform(-1/sqrt(in), 1/sqrt(in)); stored transposed
    as (in, out). BatchNorm1d (eval) uses non-trivial gamma/beta/mean/var so the
    BN-folding path is actually exercised; folded:
      scale = gamma / sqrt(var + eps), shift = beta - mean * scale.
    """
    dims = [(input_dim, 128), (128, 64), (64, 32), (32, 1)]
    keys = jax.random.split(key, 2 * len(dims) + 8)
    params = {}
    for idx, (fan_in, fan_out) in enumerate(dims):
        bound = 1.0 / jnp.sqrt(jnp.float32(fan_in))
        w = jax.random.uniform(keys[2 * idx], (fan_in, fan_out),
                               minval=-bound, maxval=bound, dtype=jnp.float32)
        b = jax.random.uniform(keys[2 * idx + 1], (1, fan_out),
                               minval=-bound, maxval=bound, dtype=jnp.float32)
        params[f"w{idx + 1}"] = w
        params[f"b{idx + 1}"] = b

    eps = 1e-5
    kidx = 2 * len(dims)
    for name, feat in (("1", 128), ("2", 64)):
        gamma = jax.random.uniform(keys[kidx], (1, feat),
                                   minval=0.5, maxval=1.5, dtype=jnp.float32)
        beta = 0.1 * jax.random.normal(keys[kidx + 1], (1, feat), dtype=jnp.float32)
        running_mean = 0.1 * jax.random.normal(keys[kidx + 2], (1, feat), dtype=jnp.float32)
        running_var = jax.random.uniform(keys[kidx + 3], (1, feat),
                                         minval=0.5, maxval=1.5, dtype=jnp.float32)
        kidx += 4
        scale = gamma / jnp.sqrt(running_var + eps)
        shift = beta - running_mean * scale
        params[f"s{name}"] = scale
        params[f"t{name}"] = shift
    return params


def reference_forward(x, p):
    """Pure-JAX f32 reference using the UNfolded BN form (eval mode)."""
    h = jnp.maximum((x @ p["w1"] + p["b1"]) * p["s1"] + p["t1"], 0.0)
    h = jnp.maximum((h @ p["w2"] + p["b2"]) * p["s2"] + p["t2"], 0.0)
    h = jnp.maximum(h @ p["w3"] + p["b3"], 0.0)
    return h @ p["w4"] + p["b4"]


if __name__ == "__main__":
    key = jax.random.PRNGKey(0)
    k_x, k_p = jax.random.split(key)

    # Non-multiple batch exercises the ragged-tail path and gives a 2-step grid
    # (bt is capped at round_up(N/2, 128) = 512 -> tiles of 512 and 488).
    batch, input_dim = 1000, 32
    x = jax.random.normal(k_x, (batch, input_dim), dtype=jnp.float32)
    params = init_params(k_p, input_dim)

    folded = fold_params(params)            # one-time param prep (BN fold, bf16 cast)
    out = custom_nn_forward(x, folded)
    out = jax.block_until_ready(out)

    ref = reference_forward(x, params)
    assert out.shape == (batch, 1)
    # bf16 MXU inputs vs. f32 reference -> loosened tolerance.
    assert jnp.allclose(out, ref, atol=3e-2, rtol=3e-2), "mismatch vs JAX reference"

    print("KERNEL_OK")
</pallas_src>

<mosaic_0001>
module attributes {stable_mosaic.version = 11 : i64} {
  func.func @mlp_kernel(%arg0: i32, %arg1: memref<512x32xf32, #tpu.memory_space<vmem>>, %arg2: memref<32x128xbf16, #tpu.memory_space<vmem>>, %arg3: memref<1x128xf32, #tpu.memory_space<vmem>>, %arg4: memref<128x64xbf16, #tpu.memory_space<vmem>>, %arg5: memref<1x64xf32, #tpu.memory_space<vmem>>, %arg6: memref<64x32xbf16, #tpu.memory_space<vmem>>, %arg7: memref<1x32xf32, #tpu.memory_space<vmem>>, %arg8: memref<1x32xbf16, #tpu.memory_space<vmem>>, %arg9: memref<1x1xf32, #tpu.memory_space<smem>>, %arg10: memref<1x512xf32, #tpu.memory_space<vmem>>) attributes {dimension_semantics = [#tpu.dimension_semantics<parallel>], iteration_bounds = array<i64: 2>, scalar_prefetch = 0 : i64, scratch_operands = 0 : i64, tpu.core_type = #tpu.core_type<tc>, window_params = [{transform_indices = @transform_0, window_bounds = array<i64: 512, 32>}, {pipeline_mode = #tpu.pipeline_mode<synchronous>, transform_indices = @transform_1, window_bounds = array<i64: 32, 128>}, {pipeline_mode = #tpu.pipeline_mode<synchronous>, transform_indices = @transform_2, window_bounds = array<i64: 1, 128>}, {pipeline_mode = #tpu.pipeline_mode<synchronous>, transform_indices = @transform_3, window_bounds = array<i64: 128, 64>}, {pipeline_mode = #tpu.pipeline_mode<synchronous>, transform_indices = @transform_4, window_bounds = array<i64: 1, 64>}, {pipeline_mode = #tpu.pipeline_mode<synchronous>, transform_indices = @transform_5, window_bounds = array<i64: 64, 32>}, {pipeline_mode = #tpu.pipeline_mode<synchronous>, transform_indices = @transform_6, window_bounds = array<i64: 1, 32>}, {pipeline_mode = #tpu.pipeline_mode<synchronous>, transform_indices = @transform_7, window_bounds = array<i64: 1, 32>}, {transform_indices = @transform_8, window_bounds = array<i64: 1, 1>}, {transform_indices = @transform_9, window_bounds = array<i64: 1, 512>}]} {
    %c0 = arith.constant 0 : index
    %c0_0 = arith.constant 0 : index
    %0 = vector.load %arg1[%c0, %c0_0] : memref<512x32xf32, #tpu.memory_space<vmem>>, vector<512x32xf32>
    %1 = arith.truncf %0 : vector<512x32xf32> to vector<512x32xbf16>
    %c0_1 = arith.constant 0 : index
    %c0_2 = arith.constant 0 : index
    %2 = vector.load %arg2[%c0_1, %c0_2] : memref<32x128xbf16, #tpu.memory_space<vmem>>, vector<32x128xbf16>
    %cst = arith.constant dense<0.000000e+00> : vector<512x128xf32>
    %3 = tpu.matmul %1, %2, %cst {dimension_numbers = #tpu.dot_dimension_numbers<[1], [0], [0], [1], [0, 0, 1, 1], [], []>} : vector<512x32xbf16>, vector<32x128xbf16>, vector<512x128xf32> -> vector<512x128xf32>
    %c0_3 = arith.constant 0 : index
    %c0_4 = arith.constant 0 : index
    %4 = vector.load %arg3[%c0_3, %c0_4] : memref<1x128xf32, #tpu.memory_space<vmem>>, vector<1x128xf32>
    %5 = vector.broadcast %4 : vector<1x128xf32> to vector<512x128xf32>
    %6 = arith.addf %3, %5 : vector<512x128xf32>
    %cst_5 = arith.constant 0.000000e+00 : f32
    %7 = vector.broadcast %cst_5 : f32 to vector<512x128xf32>
    %8 = arith.maximumf %6, %7 : vector<512x128xf32>
    %9 = arith.truncf %8 : vector<512x128xf32> to vector<512x128xbf16>
    %c0_6 = arith.constant 0 : index
    %c0_7 = arith.constant 0 : index
    %10 = vector.load %arg4[%c0_6, %c0_7] : memref<128x64xbf16, #tpu.memory_space<vmem>>, vector<128x64xbf16>
    %cst_8 = arith.constant dense<0.000000e+00> : vector<512x64xf32>
    %11 = tpu.matmul %9, %10, %cst_8 {dimension_numbers = #tpu.dot_dimension_numbers<[1], [0], [0], [1], [0, 0, 1, 1], [], []>} : vector<512x128xbf16>, vector<128x64xbf16>, vector<512x64xf32> -> vector<512x64xf32>
    %c0_9 = arith.constant 0 : index
    %c0_10 = arith.constant 0 : index
    %12 = vector.load %arg5[%c0_9, %c0_10] : memref<1x64xf32, #tpu.memory_space<vmem>>, vector<1x64xf32>
    %13 = vector.broadcast %12 : vector<1x64xf32> to vector<512x64xf32>
    %14 = arith.addf %11, %13 : vector<512x64xf32>
    %cst_11 = arith.constant 0.000000e+00 : f32
    %15 = vector.broadcast %cst_11 : f32 to vector<512x64xf32>
    %16 = arith.maximumf %14, %15 : vector<512x64xf32>
    %17 = arith.truncf %16 : vector<512x64xf32> to vector<512x64xbf16>
    %c0_12 = arith.constant 0 : index
    %c0_13 = arith.constant 0 : index
    %18 = vector.load %arg6[%c0_12, %c0_13] : memref<64x32xbf16, #tpu.memory_space<vmem>>, vector<64x32xbf16>
    %cst_14 = arith.constant dense<0.000000e+00> : vector<512x32xf32>
    %19 = tpu.matmul %17, %18, %cst_14 {dimension_numbers = #tpu.dot_dimension_numbers<[1], [0], [0], [1], [0, 0, 1, 1], [], []>} : vector<512x64xbf16>, vector<64x32xbf16>, vector<512x32xf32> -> vector<512x32xf32>
    %c0_15 = arith.constant 0 : index
    %c0_16 = arith.constant 0 : index
    %20 = vector.load %arg7[%c0_15, %c0_16] : memref<1x32xf32, #tpu.memory_space<vmem>>, vector<1x32xf32>
    %21 = vector.broadcast %20 : vector<1x32xf32> to vector<512x32xf32>
    %22 = arith.addf %19, %21 : vector<512x32xf32>
    %cst_17 = arith.constant 0.000000e+00 : f32
    %23 = vector.broadcast %cst_17 : f32 to vector<512x32xf32>
    %24 = arith.maximumf %22, %23 : vector<512x32xf32>
    %c0_18 = arith.constant 0 : index
    %c0_19 = arith.constant 0 : index
    %25 = vector.load %arg8[%c0_18, %c0_19] : memref<1x32xbf16, #tpu.memory_space<vmem>>, vector<1x32xbf16>
    %26 = arith.truncf %24 : vector<512x32xf32> to vector<512x32xbf16>
    %cst_20 = arith.constant dense<0.000000e+00> : vector<1x512xf32>
    %27 = tpu.matmul %25, %26, %cst_20 {dimension_numbers = #tpu.dot_dimension_numbers<[1], [1], [0], [0], [0, 0, 1, 0], [], []>} : vector<1x32xbf16>, vector<512x32xbf16>, vector<1x512xf32> -> vector<1x512xf32>
    %c0_21 = arith.constant 0 : index
    %c0_22 = arith.constant 0 : index
    %28 = memref.load %arg9[%c0_21, %c0_22] : memref<1x1xf32, #tpu.memory_space<smem>>
    %29 = vector.broadcast %28 : f32 to vector<1x512xf32>
    %30 = arith.addf %27, %29 : vector<1x512xf32>
    %c0_23 = arith.constant 0 : index
    %c0_24 = arith.constant 0 : index
    %31 = vector.load %arg10[%c0_23, %c0_24] : memref<1x512xf32, #tpu.memory_space<vmem>>, vector<1x512xf32>
    tpu.vector_store %arg10[%c0_23, %c0_24], %30 {strides = array<i32>} : memref<1x512xf32, #tpu.memory_space<vmem>>, vector<1x512xf32>,
    return
  }
  func.func @transform_0(%arg0: i32) -> (i32, i32) {
    %c0_i32 = arith.constant 0 : i32
    %c0_i32_0 = arith.constant 0 : i32
    return %arg0, %c0_i32 : i32, i32
  }
  func.func @transform_1(%arg0: i32) -> (i32, i32) {
    %c0_i32 = arith.constant 0 : i32
    %c0_i32_0 = arith.constant 0 : i32
    %c0_i32_1 = arith.constant 0 : i32
    return %c0_i32, %c0_i32_0 : i32, i32
  }
  func.func @transform_2(%arg0: i32) -> (i32, i32) {
    %c0_i32 = arith.constant 0 : i32
    %c0_i32_0 = arith.constant 0 : i32
    %c0_i32_1 = arith.constant 0 : i32
    return %c0_i32, %c0_i32_0 : i32, i32
  }
  func.func @transform_3(%arg0: i32) -> (i32, i32) {
    %c0_i32 = arith.constant 0 : i32
    %c0_i32_0 = arith.constant 0 : i32
    %c0_i32_1 = arith.constant 0 : i32
    return %c0_i32, %c0_i32_0 : i32, i32
  }
  func.func @transform_4(%arg0: i32) -> (i32, i32) {
    %c0_i32 = arith.constant 0 : i32
    %c0_i32_0 = arith.constant 0 : i32
    %c0_i32_1 = arith.constant 0 : i32
    return %c0_i32, %c0_i32_0 : i32, i32
  }
  func.func @transform_5(%arg0: i32) -> (i32, i32) {
    %c0_i32 = arith.constant 0 : i32
    %c0_i32_0 = arith.constant 0 : i32
    %c0_i32_1 = arith.constant 0 : i32
    return %c0_i32, %c0_i32_0 : i32, i32
  }
  func.func @transform_6(%arg0: i32) -> (i32, i32) {
    %c0_i32 = arith.constant 0 : i32
    %c0_i32_0 = arith.constant 0 : i32
    %c0_i32_1 = arith.constant 0 : i32
    return %c0_i32, %c0_i32_0 : i32, i32
  }
  func.func @transform_7(%arg0: i32) -> (i32, i32) {
    %c0_i32 = arith.constant 0 : i32
    %c0_i32_0 = arith.constant 0 : i32
    %c0_i32_1 = arith.constant 0 : i32
    return %c0_i32, %c0_i32_0 : i32, i32
  }
  func.func @transform_8(%arg0: i32) -> (i32, i32) {
    %c0_i32 = arith.constant 0 : i32
    %c0_i32_0 = arith.constant 0 : i32
    %c0_i32_1 = arith.constant 0 : i32
    return %c0_i32, %c0_i32_0 : i32, i32
  }
  func.func @transform_9(%arg0: i32) -> (i32, i32) {
    %c0_i32 = arith.constant 0 : i32
    %c0_i32_0 = arith.constant 0 : i32
    return %c0_i32, %arg0 : i32, i32
  }
}

</mosaic_0001>

<bundles_post_ra>
// kernel: tpu_custom_call.1
= control target key start
LH: loop header
LB: loop body
LE: loop exit
PB: predicated region body
PF: predicated region fallthrough
CT: control target
= control target key end

     0   :  { %s3448_s0 = inlined_call_operand.vmem [shape: f32[1000,32], index: 0, kind: input, shape index: {}]   ;;  %s3449_s1 = inlined_call_operand.vmem [shape: bf16[32,128], index: 1, kind: input, shape index: {}]   ;;  %s3450_s2 = inlined_call_operand.vmem [shape: f32[1,128], index: 2, kind: input, shape index: {}]   ;;  %s3451_s3 = inlined_call_operand.vmem [shape: bf16[128,64], index: 3, kind: input, shape index: {}]   ;;  %s3452_s4 = inlined_call_operand.vmem [shape: f32[1,64], index: 4, kind: input, shape index: {}]   ;;  %s3453_s5 = inlined_call_operand.vmem [shape: bf16[64,32], index: 5, kind: input, shape index: {}]   ;;  %s3454_s6 = inlined_call_operand.vmem [shape: f32[1,32], index: 6, kind: input, shape index: {}]   ;;  %s3455_s7 = inlined_call_operand.vmem [shape: bf16[1,32], index: 7, kind: input, shape index: {}]   ;;  %s3456_s8 = inlined_call_operand.<no memory space> [shape: f32[1,1], index: 8, kind: input, shape index: {}]   ;;  %s3457_s9 = inlined_call_operand.hbm [shape: f32[1,1000], index: 9, kind: output, shape index: {}]  }
   0x1   :  { %14 = sst [smem:[#allocation2]] %s3456_s8 }
   0x2   :  { %15 = vsyncpa [#allocation4], 0 }
   0x3   :  { %17 = vsyncpa [#allocation4 + $0x1], 0  ;;  %s2877_s11 = smov 0   ;;  %s2879_s12 = smov 0  }
   0x4   :  { %s2881_s13 = smov 0   ;;  %s2883_s14 = smov 0  }
   0x5 LB: > { %s2225_s8 = sadd.s32 4294967295, %s2820_s14   ;;  %s2226_s15 = sadd.s32 4294967294, %s2820_s14   ;;  %s2820_s14 = sphi %s2883_s14, %s3463_s14   ;;  %s2816_s13 = sphi %s2881_s13, %s3462_s13   ;;  %s2812_s12 = sphi %s2879_s12, %s3461_s12   ;;  %s2808_s11 = sphi %s2877_s11, %s3460_s11  }
   0x6   : > { %s2900_s16 = sadd.s32 1, %s2820_s14   ;;  %s224_s17 = sadd.s32 1, %s2816_s13 }
   0x7   : > { %s221_s18 = ssub.s32 %s2820_s14, %s2900_s16  ;;  %p234_p0 = scmp.ne.s32.totalorder %s2816_s13, %s2812_s12 }
   0x8   : > { %p222_p1 = scmp.eq.s32.totalorder %s221_s18, 0  ;;  %p235_p2 = scmp.eq.s32.totalorder %s2225_s8, 1 }
   0x9   : > { %p240_p3 = scmp.ne.s32.totalorder %s2812_s12, %s2808_s11  ;;  %p241_p4 = scmp.eq.s32.totalorder %s2226_s15, 1 }
   0xa   : > { %s2910_s19 = scalar_select %p222_p1, %s2816_s13, %s224_s17  }
   0xb   : > { %p2912_p5 = por %p235_p2, %p234_p0  ;;  %p2916_p6 = por %p241_p4, %p240_p3 }
   0xc   : > { %p2229_p7 = scmp.ge.s32.totalorder %s2820_s14, 1  ;;  %p300_p8 = scmp.lt.s32.totalorder %s2820_s14, 3 }
   0xe   : > { %p301_p9 = pnand %p2229_p7, %p300_p8 }
   0xf   : > { %v2744_v0 = vld [vmem:[%s3449_s1] sm:$0xff] (!%p301_p9)   ;;  %s2925_s24 = sshll.u32 (!%p301_p9), %s2225_s8, 6  ;;  %v2745_v1 = vld [vmem:[%s3449_s1 + $0x8] sm:$0xff] (!%p301_p9)   ;;  %v2748_v4 = vld [vmem:[%s3451_s3 + $0x10] sm:$0xff] (!%p301_p9)   ;;  %vm475_vm0 = vcmask (!%p301_p9), 261120   ;;  %vm1452_vm1 = vcmask (!%p301_p9), 523264  }
  0x10   : > { %304 = sbr.rel (%p301_p9) target bundleno = 1093 (0x445), region = 56  ;;  %p345_p10 = scmp.lt.s32.totalorder (!%p301_p9), %s2925_s24, 124  ;;  %2468 = vmatprep.subr.bf16.mxu0 (!%p301_p9), %v2744_v0  ;;  %v2746_v2 = vld [vmem:[%s3451_s3] sm:$0xff] (!%p301_p9)   ;;  %v2747_v3 = vld [vmem:[%s3451_s3 + $0x8] sm:$0xff] (!%p301_p9)   ;;  %v2749_v14 = vld [vmem:[%s3451_s3 + $0x18] sm:$0xff] (!%p301_p9)  }
  0x11   : > { %2469 = vmatpush3.bf16.msra.mxu0 (!%p301_p9), %v2744_v0  ;;  %2536 = vmatprep.subr.bf16.mxu1 (!%p301_p9), %v2746_v2  ;;  %v2750_v31 = vld [vmem:[%s3451_s3 + $0x20] sm:$0xff] (!%p301_p9)   ;;  %v2751_v32 = vld [vmem:[%s3451_s3 + $0x28] sm:$0xff] (!%p301_p9)   ;;  %s337_s26 = sand.u32 (!%p301_p9), 1, %s2812_s12   ;;  %s2823_s22 = smov (!%p301_p9), [#allocation3]  }
  0x12   : > { %2470 = vmatprep.subr.bf16.mxu0 (!%p301_p9), %v2745_v1  ;;  %2537 = vmatpush3.bf16.msra.mxu1 (!%p301_p9), %v2746_v2  ;;  %s2153_s15 = scalar_lea.sflag (!%p301_p9), [#allocation4], %s337_s26  ;;  %s2762_s23 = sshll.u32 (!%p301_p9), %s2823_s22, 4  ;;  %s2763_s23 = int_to_ptr.vmem [resolvable:$false] %s2762_s23 }
  0x13   : > { %2538 = vmatprep.subr.bf16.mxu1 (!%p301_p9), %v2747_v3  ;;  %s2764_s25 = scalar_lea.vmem (!%p301_p9), %s2763_s23, 128 }
  0x15   : > { %2471 = vmatpush3.bf16.msra.mxu0 (!%p301_p9), %v2745_v1 }
  0x16   : > { %2539 = vmatpush3.bf16.msra.mxu1 (!%p301_p9), %v2747_v3 }
  0x17   : > { %s346_s27 = scalar_select %p345_p10, %s2925_s24, 124  ;;  %2540 = vmatprep.subr.bf16.mxu1 %v2748_v4 }
  0x19   : > { %s2232_s8 = sshll.u32 %s346_s27, 3  ;;  %s2230_s27 = sshll.u32 %s337_s26, 2 }
  0x1a   : > { %s2941_s18 = scalar_lea.vmem %s3448_s0, %s2232_s8  ;;  %2541 = vmatpush3.bf16.msra.mxu1 %v2748_v4  ;;  %s339_s28 = scalar_lea.vmem [#allocation3], %s2230_s27 }
  0x1b   : > { %v356_v5 = vld [vmem:[%s2941_s18] sm:$0xff]  ;;  %v357_v6 = vld [vmem:[%s2941_s18 + $0x8] sm:$0xff]  ;;  %v358_v7 = vld [vmem:[%s2941_s18 + $0x10] sm:$0xff]  ;;  %2542 = vmatprep.subr.bf16.mxu1 %v2749_v14  ;;  %s2167_s29 = sshll.u32 %s339_s28, 4  ;;  %s3406_s8 = scalar_lea.hbm %s3457_s9, %s2925_s24  ;;  %s3408_s29 = int_to_ptr.vmem [resolvable:$true] %s2167_s29 }
  0x1c   : > { %v420_v8 = vpack.c.bf16 %v357_v6, %v356_v5  ;;  %v359_v9 = vld [vmem:[%s2941_s18 + $0x18] sm:$0xff]  ;;  %v360_v10 = vld [vmem:[%s2941_s18 + $0x20] sm:$0xff]  ;;  %v361_v11 = vld [vmem:[%s2941_s18 + $0x28] sm:$0xff]  ;;  %s2758_s17 = scalar_lea.vmem %s3408_s29, 64  ;;  %p2765_p0 = scmp.lt.s32.totalorder %s3408_s29, %s2763_s23 }
  0x1d   : > { %v421_v12 = vpack.c.bf16 %v359_v9, %v358_v7  ;;  %v422_v13 = vpack.c.bf16 %v361_v11, %v360_v10  ;;  %v362_v15 = vld [vmem:[%s2941_s18 + $0x30] sm:$0xff]  ;;  %v363_v16 = vld [vmem:[%s2941_s18 + $0x38] sm:$0xff]  ;;  %v364_v17 = vld [vmem:[%s2941_s18 + $0x40] sm:$0xff]  ;;  %p2759_p11 = scmp.ne.s32.totalorder %s3408_s29, %s2758_s17  ;;  %p2766_p1 = scmp.lt.s32.totalorder %s2764_s25, %s2758_s17 }
  0x1e   : > { %2472 = vmatprep.mubr.msk.bf16.mxu0 %vm475_vm0, %v420_v8  ;;  %v365_v18 = vld [vmem:[%s2941_s18 + $0x48] sm:$0xff]  ;;  %v423_v19 = vpack.c.bf16 %v363_v16, %v362_v15  ;;  %2543 = vmatpush3.bf16.msra.mxu1 %v2749_v14  ;;  %v366_v21 = vld [vmem:[%s2941_s18 + $0x50] sm:$0xff]  ;;  %v367_v22 = vld [vmem:[%s2941_s18 + $0x58] sm:$0xff] }
  0x1f   : > { %2473 = vmatmul.mubr.msk.bf16.vlgmr.msra.gmra.mrb[0].mxu0 %vm475_vm0, %v421_v12  ;;  %v424_v20 = vpack.c.bf16 %v365_v18, %v364_v17  ;;  %v368_v23 = vld [vmem:[%s2941_s18 + $0x60] sm:$0xff]  ;;  %v369_v24 = vld [vmem:[%s2941_s18 + $0x68] sm:$0xff]  ;;  %v425_v25 = vpack.c.bf16 %v367_v22, %v366_v21  ;;  %v370_v27 = vld [vmem:[%s2941_s18 + $0x70] sm:$0xff]  ;;  %2544 = vmatprep.subr.bf16.mxu1 %v2750_v31  ;;  %p2760_p12 = pnand %p2759_p11, %p2912_p5  ;;  %p2767_p2 = por %p2766_p1, %p2765_p0 }
  0x20   : > { %2476 = vmatprep.mubr.msk.bf16.mxu0 %vm475_vm0, %v422_v13  ;;  %v426_v26 = vpack.c.bf16 %v369_v24, %v368_v23  ;;  %v371_v28 = vld [vmem:[%s2941_s18 + $0x78] sm:$0xff]  ;;  %v372_v29 = vld [vmem:[%s2941_s18 + $0x80] sm:$0xff]  ;;  %v373_v30 = vld [vmem:[%s2941_s18 + $0x88] sm:$0xff] }
  0x21   : > { %v427_v33 = vpack.c.bf16 %v371_v28, %v370_v27  ;;  %v428_v34 = vpack.c.bf16 %v373_v30, %v372_v29  ;;  %v374_v35 = vld [vmem:[%s2941_s18 + $0x90] sm:$0xff]  ;;  %v375_v36 = vld [vmem:[%s2941_s18 + $0x98] sm:$0xff]  ;;  %v376_v37 = vld [vmem:[%s2941_s18 + $0xa0] sm:$0xff]  ;;  %p2761_p13 = pneg %p2760_p12 }
  0x22   : > { %2545 = vmatpush3.bf16.msra.mxu1 %v2750_v31  ;;  %v377_v38 = vld [vmem:[%s2941_s18 + $0xa8] sm:$0xff]  ;;  %v429_v39 = vpack.c.bf16 %v375_v36, %v374_v35  ;;  %v378_v41 = vld [vmem:[%s2941_s18 + $0xb0] sm:$0xff]  ;;  %v379_v42 = vld [vmem:[%s2941_s18 + $0xb8] sm:$0xff] }
  0x23   : > { %2546 = vmatprep.subr.bf16.mxu1 %v2751_v32  ;;  %v430_v40 = vpack.c.bf16 %v377_v38, %v376_v37  ;;  %v380_v43 = vld [vmem:[%s2941_s18 + $0xc0] sm:$0xff]  ;;  %v381_v44 = vld [vmem:[%s2941_s18 + $0xc8] sm:$0xff]  ;;  %v431_v45 = vpack.c.bf16 %v379_v42, %v378_v41  ;;  %v382_v47 = vld [vmem:[%s2941_s18 + $0xd0] sm:$0xff]  ;;  %p2768_p3 = pnand %p2767_p2, %p2761_p13 }
  0x24   : > { %v432_v46 = vpack.c.bf16 %v381_v44, %v380_v43  ;;  %v383_v48 = vld [vmem:[%s2941_s18 + $0xd8] sm:$0xff]  ;;  %v384_v49 = vld [vmem:[%s2941_s18 + $0xe0] sm:$0xff]  ;;  %v385_v50 = vld [vmem:[%s2941_s18 + $0xe8] sm:$0xff] }
  0x25   : > { %v433_v51 = vpack.c.bf16 %v383_v48, %v382_v47  ;;  %v434_v52 = vpack.c.bf16 %v385_v50, %v384_v49  ;;  %v386_v53 = vld [vmem:[%s2941_s18 + $0xf0] sm:$0xff]  ;;  %v387_v54 = vld [vmem:[%s2941_s18 + $0xf8] sm:$0xff]  ;;  %v388_v55 = vld [vmem:[%s2941_s18 + $0x100] sm:$0xff] }
  0x26   : > { %2547 = vmatpush3.bf16.msra.mxu1 %v2751_v32  ;;  %v389_v56 = vld [vmem:[%s2941_s18 + $0x108] sm:$0xff]  ;;  %v435_v57 = vpack.c.bf16 %v387_v54, %v386_v53  ;;  %v390_v59 = vld [vmem:[%s2941_s18 + $0x110] sm:$0xff]  ;;  %v391_v60 = vld [vmem:[%s2941_s18 + $0x118] sm:$0xff] }
  0x27   : > { %2477 = vmatmul.mubr.msk.bf16.gmra.mrb[4].mxu0 %vm475_vm0, %v423_v19  ;;  %v436_v58 = vpack.c.bf16 %v389_v56, %v388_v55  ;;  %v392_v61 = vld [vmem:[%s2941_s18 + $0x120] sm:$0xff]  ;;  %v393_v62 = vld [vmem:[%s2941_s18 + $0x128] sm:$0xff]  ;;  %v437_v63 = vpack.c.bf16 %v391_v60, %v390_v59  ;;  %v394_v1 = vld [vmem:[%s2941_s18 + $0x130] sm:$0xff] }
  0x28   : > { %2480 = vmatprep.mubr.msk.bf16.mxu0 %vm475_vm0, %v424_v20  ;;  %v438_v0 = vpack.c.bf16 %v393_v62, %v392_v61  ;;  %v395_v2 = vld [vmem:[%s2941_s18 + $0x138] sm:$0xff]  ;;  %v396_v3 = vld [vmem:[%s2941_s18 + $0x140] sm:$0xff]  ;;  %v397_v4 = vld [vmem:[%s2941_s18 + $0x148] sm:$0xff] }
  0x29   : > { %v439_v5 = vpack.c.bf16 %v395_v2, %v394_v1  ;;  %v440_v6 = vpack.c.bf16 %v397_v4, %v396_v3  ;;  %v398_v7 = vld [vmem:[%s2941_s18 + $0x150] sm:$0xff]  ;;  %v399_v8 = vld [vmem:[%s2941_s18 + $0x158] sm:$0xff]  ;;  %v400_v9 = vld [vmem:[%s2941_s18 + $0x160] sm:$0xff] }
  0x2a   : > { %v401_v10 = vld [vmem:[%s2941_s18 + $0x168] sm:$0xff]  ;;  %v441_v11 = vpack.c.bf16 %v399_v8, %v398_v7  ;;  %v402_v13 = vld [vmem:[%s2941_s18 + $0x170] sm:$0xff]  ;;  %v403_v14 = vld [vmem:[%s2941_s18 + $0x178] sm:$0xff] }
  0x2b   : > { %v442_v12 = vpack.c.bf16 %v401_v10, %v400_v9  ;;  %v404_v15 = vld [vmem:[%s2941_s18 + $0x180] sm:$0xff]  ;;  %v405_v16 = vld [vmem:[%s2941_s18 + $0x188] sm:$0xff]  ;;  %v443_v17 = vpack.c.bf16 %v403_v14, %v402_v13  ;;  %v2752_v18 = vld [vmem:[%s3451_s3 + $0x30] sm:$0xff]  }
  0x2c   : > { %v444_v19 = vpack.c.bf16 %v405_v16, %v404_v15  ;;  %2548 = vmatprep.subr.bf16.mxu1 %v2752_v18  ;;  %v2753_v20 = vld [vmem:[%s3451_s3 + $0x38] sm:$0xff]   ;;  %v406_v21 = vld [vmem:[%s2941_s18 + $0x190] sm:$0xff]  ;;  %v408_v23 = vld [vmem:[%s2941_s18 + $0x1a0] sm:$0xff] }
  0x2d   : > { %2549 = vmatpush3.bf16.msra.mxu1 %v2752_v18  ;;  %v407_v22 = vld [vmem:[%s2941_s18 + $0x198] sm:$0xff]  ;;  %v409_v24 = vld [vmem:[%s2941_s18 + $0x1a8] sm:$0xff]  ;;  %v410_v27 = vld [vmem:[%s2941_s18 + $0x1b0] sm:$0xff] }
  0x2e   : > { %2550 = vmatprep.subr.bf16.mxu1 %v2753_v20  ;;  %v411_v28 = vld [vmem:[%s2941_s18 + $0x1b8] sm:$0xff]  ;;  %v412_v29 = vld [vmem:[%s2941_s18 + $0x1c0] sm:$0xff]  ;;  %v413_v30 = vld [vmem:[%s2941_s18 + $0x1c8] sm:$0xff] }
  0x2f   : > { %2481 = vmatmul.mubr.msk.bf16.gmra.mrb[8].mxu0 %vm475_vm0, %v425_v25  ;;  %v445_v25 = vpack.c.bf16 %v407_v22, %v406_v21  ;;  %v447_v31 = vpack.c.bf16 %v411_v28, %v410_v27  ;;  %v448_v32 = vpack.c.bf16 %v413_v30, %v412_v29  ;;  %v416_v35 = vld [vmem:[%s2941_s18 + $0x1e0] sm:$0xff]  ;;  %v417_v36 = vld [vmem:[%s2941_s18 + $0x1e8] sm:$0xff] }
  0x30   : > { %2484 = vmatprep.mubr.msk.bf16.mxu0 %vm475_vm0, %v426_v26  ;;  %v446_v26 = vpack.c.bf16 %v409_v24, %v408_v23  ;;  %v450_v38 = vpack.c.bf16 %v417_v36, %v416_v35  ;;  %v3060_v42 = vld [vmem:[%s3450_s2] ss:$0 sm:$0xff] }
  0x31   : > { %2551 = vmatpush3.bf16.msra.mxu1 %v2753_v20  ;;  %v2754_v50 = vld [vmem:[%s3453_s5] sm:$0xff]  }
  0x32   : > { %2616 = vmatprep.subr.bf16.mxu0 %v2754_v50 }
  0x33   : > { %2617 = vmatpush3.bf16.msra.mxu0 %v2754_v50 }
  0x37   : > { %2485 = vmatmul.mubr.msk.bf16.gmra.mrb[12].mxu0 %vm475_vm0, %v427_v33  ;;  %v414_v33 = vld [vmem:[%s2941_s18 + $0x1d0] sm:$0xff] }
  0x38   : > { %2488 = vmatprep.mubr.msk.bf16.mxu0 %vm475_vm0, %v428_v34  ;;  %v415_v34 = vld [vmem:[%s2941_s18 + $0x1d8] sm:$0xff] }
  0x39   : > { %v449_v37 = vpack.c.bf16 %v415_v34, %v414_v33 }
  0x3f   : > { %2489 = vmatmul.mubr.msk.bf16.gmra.mrb[16].mxu0 %vm475_vm0, %v429_v39  ;;  %v418_v39 = vld [vmem:[%s2941_s18 + $0x1f0] sm:$0xff] }
  0x40   : > { %2492 = vmatprep.mubr.msk.bf16.mxu0 %vm475_vm0, %v430_v40  ;;  %v419_v40 = vld [vmem:[%s2941_s18 + $0x1f8] sm:$0xff]  ;;  %s1935_s18 = sld [smem:[#allocation2]] }
  0x41   : > { %v451_v41 = vpack.c.bf16 %v419_v40, %v418_v39 }
  0x47   : > { %2493 = vmatmul.mubr.msk.bf16.gmra.mrb[20].mxu0 %vm475_vm0, %v431_v45 }
  0x48   : > { %2496 = vmatprep.mubr.msk.bf16.mxu0 %vm475_vm0, %v432_v46 }
  0x4f   : > { %2497 = vmatmul.mubr.msk.bf16.gmra.mrb[24].mxu0 %vm475_vm0, %v433_v51  ;;  %v2755_v51 = vld [vmem:[%s3453_s5 + $0x8] sm:$0xff]  }
  0x50   : > { %2500 = vmatprep.mubr.msk.bf16.mxu0 %vm475_vm0, %v434_v52  ;;  %2618 = vmatprep.subr.bf16.mxu0 %v2755_v51 }
  0x51   : > { %2619 = vmatpush3.bf16.msra.mxu0 %v2755_v51 }
  0x57   : > { %2501 = vmatmul.mubr.msk.bf16.gmra.mrb[28].mxu0 %vm475_vm0, %v435_v57 }
  0x58   : > { %2504 = vmatprep.mubr.msk.bf16.mxu0 %vm475_vm0, %v436_v58 }
  0x5f   : > { %2505 = vmatmul.mubr.msk.bf16.gmra.mrb[32].mxu0 %vm475_vm0, %v437_v63 }
  0x60   : > { %2508 = vmatprep.mubr.msk.bf16.mxu0 %vm475_vm0, %v438_v0 }
  0x67   : > { %2509 = vmatmul.mubr.msk.bf16.gmra.mrb[36].mxu0 %vm475_vm0, %v439_v5 }
  0x68   : > { %2512 = vmatprep.mubr.msk.bf16.mxu0 %vm475_vm0, %v440_v6 }
  0x6f   : > { %2513 = vmatmul.mubr.msk.bf16.gmra.mrb[40].mxu0 %vm475_vm0, %v441_v11 }
  0x70   : > { %2516 = vmatprep.mubr.msk.bf16.mxu0 %vm475_vm0, %v442_v12 }
  0x77   : > { %2517 = vmatmul.mubr.msk.bf16.gmra.mrb[44].mxu0 %vm475_vm0, %v443_v17 }
  0x78   : > { %2520 = vmatprep.mubr.msk.bf16.mxu0 %vm475_vm0, %v444_v19 }
  0x7f   : > { %2521 = vmatmul.mubr.msk.bf16.gmra.mrb[48].mxu0 %vm475_vm0, %v445_v25 }
  0x80   : > { %2524 = vmatprep.mubr.msk.bf16.mxu0 %vm475_vm0, %v446_v26 }
  0x87   : > { %2525 = vmatmul.mubr.msk.bf16.gmra.mrb[52].mxu0 %vm475_vm0, %v447_v31 }
  0x88   : > { %2528 = vmatprep.mubr.msk.bf16.mxu0 %vm475_vm0, %v448_v32 }
  0x8f   : > { %2529 = vmatmul.mubr.msk.bf16.gmra.mrb[56].mxu0 %vm475_vm0, %v449_v37 }
  0x90   : > { %2532 = vmatprep.mubr.msk.bf16.mxu0 %vm475_vm0, %v450_v38 }
  0x97   : > { %2533 = vmatmul.mubr.msk.bf16.gmra.mrb[60].mxu0 %vm475_vm0, %v451_v41 }
  0xf2   : > { %v2474_v43 = vpop.f32.mrb[0].mxu0 }
  0xf3   : > { %v615_v44 = vadd.f32 %v2474_v43, %v3060_v42  ;;  %v606_v45 = vpop.f32.mrb[1].mxu0 }
  0xf4   : > { %v607_v46 = vadd.f32 %v3060_v42, %v606_v45  ;;  %v2475_v47 = vpop.f32.mrb[2].mxu0 }
  0xf5   : > { %v618_v48 = vadd.f32 %v2475_v47, %v3060_v42  ;;  %v609_v49 = vpop.f32.mrb[3].mxu0  ;;  %v863_v53 = vmax.f32 %v615_v44, 0.0 }
  0xf6   : > { %v610_v52 = vadd.f32 %v3060_v42, %v609_v49  ;;  %v861_v55 = vmax.f32 %v607_v46, 0.0 }
  0xf7   : > { %v864_v54 = vmax.f32 %v618_v48, 0.0 }
  0xf8   : > { %v862_v56 = vmax.f32 %v610_v52, 0.0 }
  0xf9   : > { %v926_v57 = vpack.c.bf16 %v864_v54, %v863_v53 }
  0xfa   : > { %v2478_v58 = vpop.f32.mrb[4].mxu0  ;;  %v925_v59 = vpack.c.bf16 %v862_v56, %v861_v55 }
  0xfb   : > { %v631_v60 = vadd.f32 %v2478_v58, %v3060_v42  ;;  %v622_v61 = vpop.f32.mrb[5].mxu0 }
  0xfc   : > { %v623_v62 = vadd.f32 %v3060_v42, %v622_v61  ;;  %v2479_v63 = vpop.f32.mrb[6].mxu0  ;;  %2552 = vmatprep.mubr.bf16.mxu1 %v925_v59 }
  0xfd   : > { %v634_v0 = vadd.f32 %v2479_v63, %v3060_v42  ;;  %v625_v1 = vpop.f32.mrb[7].mxu0  ;;  %2553 = vmatmul.mubr.bf16.vlgmr.msra.gmra.mrb[0].mxu1 %v926_v57  ;;  %v867_v3 = vmax.f32 %v631_v60, 0.0 }
  0xfe   : > { %v626_v2 = vadd.f32 %v3060_v42, %v625_v1  ;;  %v865_v5 = vmax.f32 %v623_v62, 0.0 }
  0xff   : > { %v868_v4 = vmax.f32 %v634_v0, 0.0 }
 0x100   : > { %v866_v6 = vmax.f32 %v626_v2, 0.0 }
 0x101   : > { %v928_v7 = vpack.c.bf16 %v868_v4, %v867_v3 }
 0x102   : > { %v927_v8 = vpack.c.bf16 %v866_v6, %v865_v5  ;;  %v2482_v9 = vpop.f32.mrb[8].mxu0 }
 0x103   : > { %v647_v10 = vadd.f32 %v2482_v9, %v3060_v42  ;;  %v638_v11 = vpop.f32.mrb[9].mxu0 }
 0x104   : > { %v639_v12 = vadd.f32 %v3060_v42, %v638_v11  ;;  %v2483_v13 = vpop.f32.mrb[10].mxu0  ;;  %2556 = vmatprep.mubr.bf16.mxu1 %v927_v8 }
 0x105   : > { %v650_v14 = vadd.f32 %v2483_v13, %v3060_v42  ;;  %v641_v15 = vpop.f32.mrb[11].mxu0  ;;  %2557 = vmatmul.mubr.bf16.gmra.mrb[4].mxu1 %v928_v7  ;;  %v871_v17 = vmax.f32 %v647_v10, 0.0 }
 0x106   : > { %v642_v16 = vadd.f32 %v3060_v42, %v641_v15  ;;  %v869_v19 = vmax.f32 %v639_v12, 0.0 }
 0x107   : > { %v872_v18 = vmax.f32 %v650_v14, 0.0 }
 0x108   : > { %v870_v20 = vmax.f32 %v642_v16, 0.0 }
 0x109   : > { %v930_v21 = vpack.c.bf16 %v872_v18, %v871_v17 }
 0x10a   : > { %v929_v22 = vpack.c.bf16 %v870_v20, %v869_v19  ;;  %v2486_v23 = vpop.f32.mrb[12].mxu0 }
 0x10b   : > { %v663_v24 = vadd.f32 %v2486_v23, %v3060_v42  ;;  %v654_v25 = vpop.f32.mrb[13].mxu0 }
 0x10c   : > { %v655_v26 = vadd.f32 %v3060_v42, %v654_v25  ;;  %v2487_v27 = vpop.f32.mrb[14].mxu0  ;;  %2560 = vmatprep.mubr.bf16.mxu1 %v929_v22 }
 0x10d   : > { %v666_v28 = vadd.f32 %v2487_v27, %v3060_v42  ;;  %v657_v29 = vpop.f32.mrb[15].mxu0  ;;  %2561 = vmatmul.mubr.bf16.gmra.mrb[8].mxu1 %v930_v21  ;;  %v875_v31 = vmax.f32 %v663_v24, 0.0 }
 0x10e   : > { %v658_v30 = vadd.f32 %v3060_v42, %v657_v29  ;;  %v873_v33 = vmax.f32 %v655_v26, 0.0 }
 0x10f   : > { %v876_v32 = vmax.f32 %v666_v28, 0.0 }
 0x110   : > { %v874_v34 = vmax.f32 %v658_v30, 0.0 }
 0x111   : > { %v932_v35 = vpack.c.bf16 %v876_v32, %v875_v31 }
 0x112   : > { %v931_v36 = vpack.c.bf16 %v874_v34, %v873_v33  ;;  %v2490_v37 = vpop.f32.mrb[16].mxu0 }
 0x113   : > { %v679_v38 = vadd.f32 %v2490_v37, %v3060_v42  ;;  %v670_v39 = vpop.f32.mrb[17].mxu0 }
 0x114   : > { %v671_v40 = vadd.f32 %v3060_v42, %v670_v39  ;;  %v2491_v41 = vpop.f32.mrb[18].mxu0  ;;  %2564 = vmatprep.mubr.bf16.mxu1 %v931_v36 }
 0x115   : > { %v682_v43 = vadd.f32 %v2491_v41, %v3060_v42  ;;  %v673_v44 = vpop.f32.mrb[19].mxu0  ;;  %2565 = vmatmul.mubr.bf16.gmra.mrb[12].mxu1 %v932_v35  ;;  %v879_v46 = vmax.f32 %v679_v38, 0.0 }
 0x116   : > { %v674_v45 = vadd.f32 %v3060_v42, %v673_v44  ;;  %v877_v48 = vmax.f32 %v671_v40, 0.0 }
 0x117   : > { %v880_v47 = vmax.f32 %v682_v43, 0.0 }
 0x118   : > { %v878_v49 = vmax.f32 %v674_v45, 0.0 }
 0x119   : > { %v934_v50 = vpack.c.bf16 %v880_v47, %v879_v46 }
 0x11a   : > { %v933_v51 = vpack.c.bf16 %v878_v49, %v877_v48  ;;  %v2494_v52 = vpop.f32.mrb[20].mxu0 }
 0x11b   : > { %v695_v53 = vadd.f32 %v2494_v52, %v3060_v42  ;;  %v686_v54 = vpop.f32.mrb[21].mxu0 }
 0x11c   : > { %v687_v55 = vadd.f32 %v3060_v42, %v686_v54  ;;  %v2495_v56 = vpop.f32.mrb[22].mxu0  ;;  %2568 = vmatprep.mubr.bf16.mxu1 %v933_v51 }
 0x11d   : > { %v698_v57 = vadd.f32 %v2495_v56, %v3060_v42  ;;  %v689_v58 = vpop.f32.mrb[23].mxu0  ;;  %2569 = vmatmul.mubr.bf16.gmra.mrb[16].mxu1 %v934_v50  ;;  %v883_v60 = vmax.f32 %v695_v53, 0.0 }
 0x11e   : > { %v690_v59 = vadd.f32 %v3060_v42, %v689_v58  ;;  %v881_v62 = vmax.f32 %v687_v55, 0.0 }
 0x11f   : > { %v884_v61 = vmax.f32 %v698_v57, 0.0 }
 0x120   : > { %v882_v63 = vmax.f32 %v690_v59, 0.0 }
 0x121   : > { %v936_v0 = vpack.c.bf16 %v884_v61, %v883_v60 }
 0x122   : > { %v935_v1 = vpack.c.bf16 %v882_v63, %v881_v62  ;;  %v2498_v2 = vpop.f32.mrb[24].mxu0 }
 0x123   : > { %v711_v3 = vadd.f32 %v2498_v2, %v3060_v42  ;;  %v702_v4 = vpop.f32.mrb[25].mxu0 }
 0x124   : > { %v703_v5 = vadd.f32 %v3060_v42, %v702_v4  ;;  %v2499_v6 = vpop.f32.mrb[26].mxu0  ;;  %2572 = vmatprep.mubr.bf16.mxu1 %v935_v1 }
 0x125   : > { %v714_v7 = vadd.f32 %v2499_v6, %v3060_v42  ;;  %v705_v8 = vpop.f32.mrb[27].mxu0  ;;  %2573 = vmatmul.mubr.bf16.gmra.mrb[20].mxu1 %v936_v0  ;;  %v887_v10 = vmax.f32 %v711_v3, 0.0 }
 0x126   : > { %v706_v9 = vadd.f32 %v3060_v42, %v705_v8  ;;  %v885_v12 = vmax.f32 %v703_v5, 0.0 }
 0x127   : > { %v888_v11 = vmax.f32 %v714_v7, 0.0 }
 0x128   : > { %v886_v13 = vmax.f32 %v706_v9, 0.0 }
 0x129   : > { %v938_v14 = vpack.c.bf16 %v888_v11, %v887_v10 }
 0x12a   : > { %v937_v15 = vpack.c.bf16 %v886_v13, %v885_v12  ;;  %v2502_v16 = vpop.f32.mrb[28].mxu0 }
 0x12b   : > { %v727_v17 = vadd.f32 %v2502_v16, %v3060_v42  ;;  %v718_v18 = vpop.f32.mrb[29].mxu0 }
 0x12c   : > { %v719_v19 = vadd.f32 %v3060_v42, %v718_v18  ;;  %v2503_v20 = vpop.f32.mrb[30].mxu0  ;;  %2576 = vmatprep.mubr.bf16.mxu1 %v937_v15 }
 0x12d   : > { %v730_v21 = vadd.f32 %v2503_v20, %v3060_v42  ;;  %v721_v22 = vpop.f32.mrb[31].mxu0  ;;  %2577 = vmatmul.mubr.bf16.gmra.mrb[24].mxu1 %v938_v14  ;;  %v891_v24 = vmax.f32 %v727_v17, 0.0 }
 0x12e   : > { %v722_v23 = vadd.f32 %v3060_v42, %v721_v22  ;;  %v889_v26 = vmax.f32 %v719_v19, 0.0  ;;  %v2756_v22 = vld [vmem:[%s3453_s5 + $0x10] sm:$0xff]  }
 0x12f   : > { %v892_v25 = vmax.f32 %v730_v21, 0.0  ;;  %2620 = vmatprep.subr.bf16.mxu0 %v2756_v22 }
 0x130   : > { %v890_v27 = vmax.f32 %v722_v23, 0.0  ;;  %2621 = vmatpush3.bf16.msra.mxu0 %v2756_v22 }
 0x131   : > { %v940_v28 = vpack.c.bf16 %v892_v25, %v891_v24 }
 0x132   : > { %v939_v29 = vpack.c.bf16 %v890_v27, %v889_v26  ;;  %v2506_v30 = vpop.f32.mrb[32].mxu0 }
 0x133   : > { %v743_v31 = vadd.f32 %v2506_v30, %v3060_v42  ;;  %v734_v32 = vpop.f32.mrb[33].mxu0 }
 0x134   : > { %v735_v33 = vadd.f32 %v3060_v42, %v734_v32  ;;  %v2507_v34 = vpop.f32.mrb[34].mxu0  ;;  %2580 = vmatprep.mubr.bf16.mxu1 %v939_v29 }
 0x135   : > { %v746_v35 = vadd.f32 %v2507_v34, %v3060_v42  ;;  %v737_v36 = vpop.f32.mrb[35].mxu0  ;;  %2581 = vmatmul.mubr.bf16.gmra.mrb[28].mxu1 %v940_v28  ;;  %v895_v38 = vmax.f32 %v743_v31, 0.0  ;;  %v2757_v31 = vld [vmem:[%s3453_s5 + $0x18] sm:$0xff]  }
 0x136   : > { %v738_v37 = vadd.f32 %v3060_v42, %v737_v36  ;;  %v893_v40 = vmax.f32 %v735_v33, 0.0  ;;  %2622 = vmatprep.subr.bf16.mxu0 %v2757_v31 }
 0x137   : > { %v896_v39 = vmax.f32 %v746_v35, 0.0  ;;  %2623 = vmatpush3.bf16.msra.mxu0 %v2757_v31 }
 0x138   : > { %v894_v41 = vmax.f32 %v738_v37, 0.0 }
 0x139   : > { %v942_v43 = vpack.c.bf16 %v896_v39, %v895_v38 }
 0x13a   : > { %v941_v44 = vpack.c.bf16 %v894_v41, %v893_v40  ;;  %v2510_v45 = vpop.f32.mrb[36].mxu0 }
 0x13b   : > { %v759_v46 = vadd.f32 %v2510_v45, %v3060_v42  ;;  %v750_v47 = vpop.f32.mrb[37].mxu0 }
 0x13c   : > { %v751_v48 = vadd.f32 %v3060_v42, %v750_v47  ;;  %v2511_v49 = vpop.f32.mrb[38].mxu0  ;;  %2584 = vmatprep.mubr.bf16.mxu1 %v941_v44 }
 0x13d   : > { %v762_v50 = vadd.f32 %v2511_v49, %v3060_v42  ;;  %v753_v51 = vpop.f32.mrb[39].mxu0  ;;  %2585 = vmatmul.mubr.bf16.gmra.mrb[32].mxu1 %v942_v43  ;;  %v899_v53 = vmax.f32 %v759_v46, 0.0 }
 0x13e   : > { %v754_v52 = vadd.f32 %v3060_v42, %v753_v51  ;;  %v897_v55 = vmax.f32 %v751_v48, 0.0 }
 0x13f   : > { %v900_v54 = vmax.f32 %v762_v50, 0.0 }
 0x140   : > { %v898_v56 = vmax.f32 %v754_v52, 0.0 }
 0x141   : > { %v944_v57 = vpack.c.bf16 %v900_v54, %v899_v53 }
 0x142   : > { %v943_v58 = vpack.c.bf16 %v898_v56, %v897_v55  ;;  %v2514_v59 = vpop.f32.mrb[40].mxu0 }
 0x143   : > { %v775_v60 = vadd.f32 %v2514_v59, %v3060_v42  ;;  %v766_v61 = vpop.f32.mrb[41].mxu0 }
 0x144   : > { %v767_v62 = vadd.f32 %v3060_v42, %v766_v61  ;;  %v2515_v63 = vpop.f32.mrb[42].mxu0  ;;  %2588 = vmatprep.mubr.bf16.mxu1 %v943_v58 }
 0x145   : > { %v778_v0 = vadd.f32 %v2515_v63, %v3060_v42  ;;  %v769_v1 = vpop.f32.mrb[43].mxu0  ;;  %2589 = vmatmul.mubr.bf16.gmra.mrb[36].mxu1 %v944_v57  ;;  %v903_v3 = vmax.f32 %v775_v60, 0.0 }
 0x146   : > { %v770_v2 = vadd.f32 %v3060_v42, %v769_v1  ;;  %v901_v5 = vmax.f32 %v767_v62, 0.0 }
 0x147   : > { %v904_v4 = vmax.f32 %v778_v0, 0.0 }
 0x148   : > { %v902_v6 = vmax.f32 %v770_v2, 0.0 }
 0x149   : > { %v946_v7 = vpack.c.bf16 %v904_v4, %v903_v3 }
 0x14a   : > { %v945_v8 = vpack.c.bf16 %v902_v6, %v901_v5  ;;  %v2518_v9 = vpop.f32.mrb[44].mxu0 }
 0x14b   : > { %v791_v10 = vadd.f32 %v2518_v9, %v3060_v42  ;;  %v782_v11 = vpop.f32.mrb[45].mxu0 }
 0x14c   : > { %v783_v12 = vadd.f32 %v3060_v42, %v782_v11  ;;  %v2519_v13 = vpop.f32.mrb[46].mxu0  ;;  %2592 = vmatprep.mubr.bf16.mxu1 %v945_v8 }
 0x14d   : > { %v794_v14 = vadd.f32 %v2519_v13, %v3060_v42  ;;  %v785_v15 = vpop.f32.mrb[47].mxu0  ;;  %2593 = vmatmul.mubr.bf16.gmra.mrb[40].mxu1 %v946_v7  ;;  %v907_v17 = vmax.f32 %v791_v10, 0.0 }
 0x14e   : > { %v786_v16 = vadd.f32 %v3060_v42, %v785_v15  ;;  %v905_v19 = vmax.f32 %v783_v12, 0.0 }
 0x14f   : > { %v908_v18 = vmax.f32 %v794_v14, 0.0 }
 0x150   : > { %v906_v20 = vmax.f32 %v786_v16, 0.0 }
 0x151   : > { %v948_v21 = vpack.c.bf16 %v908_v18, %v907_v17  ;;  %v3141_v18 = vld [vmem:[%s3452_s4] ss:$0 sm:$0xff] }
 0x152   : > { %v947_v23 = vpack.c.bf16 %v906_v20, %v905_v19  ;;  %v2522_v24 = vpop.f32.mrb[48].mxu0 }
 0x153   : > { %v807_v25 = vadd.f32 %v2522_v24, %v3060_v42  ;;  %v798_v26 = vpop.f32.mrb[49].mxu0 }
 0x154   : > { %v799_v27 = vadd.f32 %v3060_v42, %v798_v26  ;;  %v2523_v28 = vpop.f32.mrb[50].mxu0  ;;  %2596 = vmatprep.mubr.bf16.mxu1 %v947_v23 }
 0x155   : > { %v810_v29 = vadd.f32 %v2523_v28, %v3060_v42  ;;  %v801_v30 = vpop.f32.mrb[51].mxu0  ;;  %2597 = vmatmul.mubr.bf16.gmra.mrb[44].mxu1 %v948_v21  ;;  %v911_v33 = vmax.f32 %v807_v25, 0.0 }
 0x156   : > { %v802_v32 = vadd.f32 %v3060_v42, %v801_v30  ;;  %v909_v35 = vmax.f32 %v799_v27, 0.0 }
 0x157   : > { %v912_v34 = vmax.f32 %v810_v29, 0.0 }
 0x158   : > { %v910_v36 = vmax.f32 %v802_v32, 0.0 }
 0x159   : > { %v950_v37 = vpack.c.bf16 %v912_v34, %v911_v33 }
 0x15a   : > { %v949_v38 = vpack.c.bf16 %v910_v36, %v909_v35  ;;  %v2526_v39 = vpop.f32.mrb[52].mxu0 }
 0x15b   : > { %v823_v40 = vadd.f32 %v2526_v39, %v3060_v42  ;;  %v814_v41 = vpop.f32.mrb[53].mxu0 }
 0x15c   : > { %2600 = vmatprep.mubr.bf16.mxu1 %v949_v38  ;;  %v815_v43 = vadd.f32 %v3060_v42, %v814_v41  ;;  %v2527_v44 = vpop.f32.mrb[54].mxu0 }
 0x15d   : > { %2601 = vmatmul.mubr.bf16.gmra.mrb[48].mxu1 %v950_v37  ;;  %v915_v45 = vmax.f32 %v823_v40, 0.0  ;;  %v826_v46 = vadd.f32 %v2527_v44, %v3060_v42  ;;  %v817_v47 = vpop.f32.mrb[55].mxu0 }
 0x15e   : > { %v913_v48 = vmax.f32 %v815_v43, 0.0  ;;  %v818_v49 = vadd.f32 %v3060_v42, %v817_v47 }
 0x15f   : > { %v916_v50 = vmax.f32 %v826_v46, 0.0 }
 0x160   : > { %v914_v51 = vmax.f32 %v818_v49, 0.0 }
 0x161   : > { %v952_v52 = vpack.c.bf16 %v916_v50, %v915_v45 }
 0x162   : > { %v951_v53 = vpack.c.bf16 %v914_v51, %v913_v48  ;;  %v2530_v54 = vpop.f32.mrb[56].mxu0 }
 0x163   : > { %v839_v55 = vadd.f32 %v2530_v54, %v3060_v42  ;;  %v830_v56 = vpop.f32.mrb[57].mxu0 }
 0x164   : > { %2604 = vmatprep.mubr.bf16.mxu1 %v951_v53  ;;  %v831_v57 = vadd.f32 %v3060_v42, %v830_v56  ;;  %v2531_v58 = vpop.f32.mrb[58].mxu0 }
 0x165   : > { %2605 = vmatmul.mubr.bf16.gmra.mrb[52].mxu1 %v952_v52  ;;  %v919_v59 = vmax.f32 %v839_v55, 0.0  ;;  %v842_v60 = vadd.f32 %v2531_v58, %v3060_v42  ;;  %v833_v61 = vpop.f32.mrb[59].mxu0 }
 0x166   : > { %v917_v62 = vmax.f32 %v831_v57, 0.0  ;;  %v834_v63 = vadd.f32 %v3060_v42, %v833_v61 }
 0x167   : > { %v920_v0 = vmax.f32 %v842_v60, 0.0 }
 0x168   : > { %v918_v1 = vmax.f32 %v834_v63, 0.0 }
 0x169   : > { %v954_v2 = vpack.c.bf16 %v920_v0, %v919_v59 }
 0x16a   : > { %v953_v3 = vpack.c.bf16 %v918_v1, %v917_v62  ;;  %v2534_v4 = vpop.f32.mrb[60].mxu0 }
 0x16b   : > { %v855_v5 = vadd.f32 %v2534_v4, %v3060_v42  ;;  %v846_v6 = vpop.f32.mrb[61].mxu0 }
 0x16c   : > { %2608 = vmatprep.mubr.bf16.mxu1 %v953_v3  ;;  %v847_v7 = vadd.f32 %v3060_v42, %v846_v6  ;;  %v2535_v8 = vpop.f32.mrb[62].mxu0 }
 0x16d   : > { %2609 = vmatmul.mubr.bf16.gmra.mrb[56].mxu1 %v954_v2  ;;  %v923_v9 = vmax.f32 %v855_v5, 0.0  ;;  %v858_v10 = vadd.f32 %v2535_v8, %v3060_v42  ;;  %v849_v11 = vpop.f32.mrb[63].mxu0 }
 0x16e   : > { %v921_v12 = vmax.f32 %v847_v7, 0.0  ;;  %v850_v13 = vadd.f32 %v3060_v42, %v849_v11 }
 0x16f   : > { %v924_v14 = vmax.f32 %v858_v10, 0.0 }
 0x170   : > { %v922_v15 = vmax.f32 %v850_v13, 0.0 }
 0x171   : > { %v956_v16 = vpack.c.bf16 %v924_v14, %v923_v9 }
 0x172   : > { %v955_v17 = vpack.c.bf16 %v922_v15, %v921_v12 }
 0x174   : > { %2612 = vmatprep.mubr.bf16.mxu1 %v955_v17 }
 0x175   : > { %2613 = vmatmul.mubr.bf16.gmra.mrb[60].mxu1 %v956_v16 }
 0x1d0   : > { %v2554_v19 = vpop.f32.mrb[0].mxu1 }
 0x1d1   : > { %v1071_v20 = vadd.f32 %v2554_v19, %v3141_v18  ;;  %v1062_v21 = vpop.f32.mrb[1].mxu1 }
 0x1d2   : > { %v1063_v22 = vadd.f32 %v3141_v18, %v1062_v21  ;;  %v2555_v23 = vpop.f32.mrb[2].mxu1 }
 0x1d3   : > { %v1074_v42 = vadd.f32 %v2555_v23, %v3141_v18  ;;  %v1065_v24 = vpop.f32.mrb[3].mxu1  ;;  %v1319_v26 = vmax.f32 %v1071_v20, 0.0 }
 0x1d4   : > { %v1066_v25 = vadd.f32 %v3141_v18, %v1065_v24  ;;  %v1317_v28 = vmax.f32 %v1063_v22, 0.0 }
 0x1d5   : > { %v1320_v27 = vmax.f32 %v1074_v42, 0.0 }
 0x1d6   : > { %v1318_v29 = vmax.f32 %v1066_v25, 0.0 }
 0x1d7   : > { %v1382_v30 = vpack.c.bf16 %v1320_v27, %v1319_v26 }
 0x1d8   : > { %v1381_v31 = vpack.c.bf16 %v1318_v29, %v1317_v28  ;;  %v2558_v32 = vpop.f32.mrb[4].mxu1 }
 0x1d9   : > { %v1087_v33 = vadd.f32 %v2558_v32, %v3141_v18  ;;  %v1078_v34 = vpop.f32.mrb[5].mxu1 }
 0x1da   : > { %v1079_v35 = vadd.f32 %v3141_v18, %v1078_v34  ;;  %v2559_v36 = vpop.f32.mrb[6].mxu1  ;;  %2624 = vmatprep.mubr.msk.bf16.mxu0 %vm1452_vm1, %v1381_v31 }
 0x1db   : > { %v1090_v37 = vadd.f32 %v2559_v36, %v3141_v18  ;;  %v1081_v38 = vpop.f32.mrb[7].mxu1  ;;  %2625 = vmatmul.mubr.msk.bf16.vlgmr.msra.gmra.mrb[64].mxu0 %vm1452_vm1, %v1382_v30  ;;  %v1323_v40 = vmax.f32 %v1087_v33, 0.0 }
 0x1dc   : > { %v1082_v39 = vadd.f32 %v3141_v18, %v1081_v38  ;;  %v1321_v43 = vmax.f32 %v1079_v35, 0.0 }
 0x1dd   : > { %v1324_v41 = vmax.f32 %v1090_v37, 0.0 }
 0x1de   : > { %v1322_v44 = vmax.f32 %v1082_v39, 0.0 }
 0x1df   : > { %v1384_v45 = vpack.c.bf16 %v1324_v41, %v1323_v40 }
 0x1e0   : > { %v1383_v46 = vpack.c.bf16 %v1322_v44, %v1321_v43  ;;  %v2562_v47 = vpop.f32.mrb[8].mxu1 }
 0x1e1   : > { %v1103_v48 = vadd.f32 %v2562_v47, %v3141_v18  ;;  %v1094_v49 = vpop.f32.mrb[9].mxu1 }
 0x1e2   : > { %v1095_v50 = vadd.f32 %v3141_v18, %v1094_v49  ;;  %v2563_v51 = vpop.f32.mrb[10].mxu1  ;;  %2628 = vmatprep.mubr.msk.bf16.mxu0 %vm1452_vm1, %v1383_v46 }
 0x1e3   : > { %v1106_v52 = vadd.f32 %v2563_v51, %v3141_v18  ;;  %v1097_v53 = vpop.f32.mrb[11].mxu1  ;;  %2629 = vmatmul.mubr.msk.bf16.gmra.mrb[68].mxu0 %vm1452_vm1, %v1384_v45  ;;  %v1327_v55 = vmax.f32 %v1103_v48, 0.0 }
 0x1e4   : > { %v1098_v54 = vadd.f32 %v3141_v18, %v1097_v53  ;;  %v1325_v57 = vmax.f32 %v1095_v50, 0.0 }
 0x1e5   : > { %v1328_v56 = vmax.f32 %v1106_v52, 0.0 }
 0x1e6   : > { %v1326_v58 = vmax.f32 %v1098_v54, 0.0 }
 0x1e7   : > { %v1386_v59 = vpack.c.bf16 %v1328_v56, %v1327_v55 }
 0x1e8   : > { %v1385_v60 = vpack.c.bf16 %v1326_v58, %v1325_v57  ;;  %v2566_v61 = vpop.f32.mrb[12].mxu1 }
 0x1e9   : > { %v1119_v62 = vadd.f32 %v2566_v61, %v3141_v18  ;;  %v1110_v63 = vpop.f32.mrb[13].mxu1 }
 0x1ea   : > { %v1111_v0 = vadd.f32 %v3141_v18, %v1110_v63  ;;  %v2567_v1 = vpop.f32.mrb[14].mxu1  ;;  %2632 = vmatprep.mubr.msk.bf16.mxu0 %vm1452_vm1, %v1385_v60 }
 0x1eb   : > { %v1122_v2 = vadd.f32 %v2567_v1, %v3141_v18  ;;  %v1113_v3 = vpop.f32.mrb[15].mxu1  ;;  %2633 = vmatmul.mubr.msk.bf16.gmra.mrb[72].mxu0 %vm1452_vm1, %v1386_v59  ;;  %v1331_v5 = vmax.f32 %v1119_v62, 0.0 }
 0x1ec   : > { %v1114_v4 = vadd.f32 %v3141_v18, %v1113_v3  ;;  %v1329_v7 = vmax.f32 %v1111_v0, 0.0 }
 0x1ed   : > { %v1332_v6 = vmax.f32 %v1122_v2, 0.0 }
 0x1ee   : > { %v1330_v8 = vmax.f32 %v1114_v4, 0.0 }
 0x1ef   : > { %v1388_v9 = vpack.c.bf16 %v1332_v6, %v1331_v5 }
 0x1f0   : > { %v1387_v10 = vpack.c.bf16 %v1330_v8, %v1329_v7  ;;  %v2570_v11 = vpop.f32.mrb[16].mxu1 }
 0x1f1   : > { %v1135_v12 = vadd.f32 %v2570_v11, %v3141_v18  ;;  %v1126_v13 = vpop.f32.mrb[17].mxu1 }
 0x1f2   : > { %v1127_v14 = vadd.f32 %v3141_v18, %v1126_v13  ;;  %v2571_v15 = vpop.f32.mrb[18].mxu1  ;;  %2636 = vmatprep.mubr.msk.bf16.mxu0 %vm1452_vm1, %v1387_v10 }
 0x1f3   : > { %v1138_v16 = vadd.f32 %v2571_v15, %v3141_v18  ;;  %v1129_v17 = vpop.f32.mrb[19].mxu1  ;;  %2637 = vmatmul.mubr.msk.bf16.gmra.mrb[76].mxu0 %vm1452_vm1, %v1388_v9  ;;  %v1335_v20 = vmax.f32 %v1135_v12, 0.0 }
 0x1f4   : > { %v1130_v19 = vadd.f32 %v3141_v18, %v1129_v17  ;;  %v1333_v22 = vmax.f32 %v1127_v14, 0.0 }
 0x1f5   : > { %v1336_v21 = vmax.f32 %v1138_v16, 0.0 }
 0x1f6   : > { %v1334_v23 = vmax.f32 %v1130_v19, 0.0 }
 0x1f7   : > { %v1390_v42 = vpack.c.bf16 %v1336_v21, %v1335_v20 }
 0x1f8   : > { %v1389_v24 = vpack.c.bf16 %v1334_v23, %v1333_v22  ;;  %v2574_v25 = vpop.f32.mrb[20].mxu1 }
 0x1f9   : > { %v1151_v26 = vadd.f32 %v2574_v25, %v3141_v18  ;;  %v1142_v27 = vpop.f32.mrb[21].mxu1 }
 0x1fa   : > { %v1143_v28 = vadd.f32 %v3141_v18, %v1142_v27  ;;  %v2575_v29 = vpop.f32.mrb[22].mxu1  ;;  %2640 = vmatprep.mubr.msk.bf16.mxu0 %vm1452_vm1, %v1389_v24 }
 0x1fb   : > { %v1154_v30 = vadd.f32 %v2575_v29, %v3141_v18  ;;  %v1145_v31 = vpop.f32.mrb[23].mxu1  ;;  %2641 = vmatmul.mubr.msk.bf16.gmra.mrb[80].mxu0 %vm1452_vm1, %v1390_v42  ;;  %v1339_v33 = vmax.f32 %v1151_v26, 0.0 }
 0x1fc   : > { %v1146_v32 = vadd.f32 %v3141_v18, %v1145_v31  ;;  %v1337_v35 = vmax.f32 %v1143_v28, 0.0 }
 0x1fd   : > { %v1340_v34 = vmax.f32 %v1154_v30, 0.0 }
 0x1fe   : > { %v1338_v36 = vmax.f32 %v1146_v32, 0.0 }
 0x1ff   : > { %v1392_v37 = vpack.c.bf16 %v1340_v34, %v1339_v33 }
 0x200   : > { %v1391_v38 = vpack.c.bf16 %v1338_v36, %v1337_v35  ;;  %v2578_v39 = vpop.f32.mrb[24].mxu1 }
 0x201   : > { %v1167_v40 = vadd.f32 %v2578_v39, %v3141_v18  ;;  %v1158_v41 = vpop.f32.mrb[25].mxu1 }
 0x202   : > { %v1159_v43 = vadd.f32 %v3141_v18, %v1158_v41  ;;  %v2579_v44 = vpop.f32.mrb[26].mxu1  ;;  %2644 = vmatprep.mubr.msk.bf16.mxu0 %vm1452_vm1, %v1391_v38 }
 0x203   : > { %v1170_v45 = vadd.f32 %v2579_v44, %v3141_v18  ;;  %v1161_v46 = vpop.f32.mrb[27].mxu1  ;;  %2645 = vmatmul.mubr.msk.bf16.gmra.mrb[84].mxu0 %vm1452_vm1, %v1392_v37  ;;  %v1343_v48 = vmax.f32 %v1167_v40, 0.0 }
 0x204   : > { %v1162_v47 = vadd.f32 %v3141_v18, %v1161_v46  ;;  %v1341_v50 = vmax.f32 %v1159_v43, 0.0 }
 0x205   : > { %v1344_v49 = vmax.f32 %v1170_v45, 0.0 }
 0x206   : > { %v1342_v51 = vmax.f32 %v1162_v47, 0.0 }
 0x207   : > { %v1394_v52 = vpack.c.bf16 %v1344_v49, %v1343_v48 }
 0x208   : > { %v1393_v53 = vpack.c.bf16 %v1342_v51, %v1341_v50  ;;  %v2582_v54 = vpop.f32.mrb[28].mxu1 }
 0x209   : > { %v1183_v55 = vadd.f32 %v2582_v54, %v3141_v18  ;;  %v1174_v56 = vpop.f32.mrb[29].mxu1 }
 0x20a   : > { %v1175_v57 = vadd.f32 %v3141_v18, %v1174_v56  ;;  %v2583_v58 = vpop.f32.mrb[30].mxu1  ;;  %2648 = vmatprep.mubr.msk.bf16.mxu0 %vm1452_vm1, %v1393_v53 }
 0x20b   : > { %v1186_v59 = vadd.f32 %v2583_v58, %v3141_v18  ;;  %v1177_v60 = vpop.f32.mrb[31].mxu1  ;;  %2649 = vmatmul.mubr.msk.bf16.gmra.mrb[88].mxu0 %vm1452_vm1, %v1394_v52  ;;  %v1347_v62 = vmax.f32 %v1183_v55, 0.0 }
 0x20c   : > { %v1178_v61 = vadd.f32 %v3141_v18, %v1177_v60  ;;  %v1345_v0 = vmax.f32 %v1175_v57, 0.0 }
 0x20d   : > { %v1348_v63 = vmax.f32 %v1186_v59, 0.0 }
 0x20e   : > { %v1346_v1 = vmax.f32 %v1178_v61, 0.0 }
 0x20f   : > { %v1396_v2 = vpack.c.bf16 %v1348_v63, %v1347_v62 }
 0x210   : > { %v1395_v3 = vpack.c.bf16 %v1346_v1, %v1345_v0  ;;  %v2586_v4 = vpop.f32.mrb[32].mxu1 }
 0x211   : > { %v1199_v5 = vadd.f32 %v2586_v4, %v3141_v18  ;;  %v1190_v6 = vpop.f32.mrb[33].mxu1 }
 0x212   : > { %v1191_v7 = vadd.f32 %v3141_v18, %v1190_v6  ;;  %v2587_v8 = vpop.f32.mrb[34].mxu1  ;;  %2652 = vmatprep.mubr.msk.bf16.mxu0 %vm1452_vm1, %v1395_v3 }
 0x213   : > { %v1202_v9 = vadd.f32 %v2587_v8, %v3141_v18  ;;  %v1193_v10 = vpop.f32.mrb[35].mxu1  ;;  %2653 = vmatmul.mubr.msk.bf16.gmra.mrb[92].mxu0 %vm1452_vm1, %v1396_v2  ;;  %v1351_v12 = vmax.f32 %v1199_v5, 0.0 }
 0x214   : > { %v1194_v11 = vadd.f32 %v3141_v18, %v1193_v10  ;;  %v1349_v14 = vmax.f32 %v1191_v7, 0.0 }
 0x215   : > { %v1352_v13 = vmax.f32 %v1202_v9, 0.0 }
 0x216   : > { %v1350_v15 = vmax.f32 %v1194_v11, 0.0 }
 0x217   : > { %v1398_v16 = vpack.c.bf16 %v1352_v13, %v1351_v12 }
 0x218   : > { %v1397_v17 = vpack.c.bf16 %v1350_v15, %v1349_v14  ;;  %v2590_v19 = vpop.f32.mrb[36].mxu1 }
 0x219   : > { %v1215_v20 = vadd.f32 %v2590_v19, %v3141_v18  ;;  %v1206_v21 = vpop.f32.mrb[37].mxu1 }
 0x21a   : > { %v1207_v22 = vadd.f32 %v3141_v18, %v1206_v21  ;;  %v2591_v23 = vpop.f32.mrb[38].mxu1  ;;  %2656 = vmatprep.mubr.msk.bf16.mxu0 %vm1452_vm1, %v1397_v17 }
 0x21b   : > { %v1218_v42 = vadd.f32 %v2591_v23, %v3141_v18  ;;  %v1209_v24 = vpop.f32.mrb[39].mxu1  ;;  %2657 = vmatmul.mubr.msk.bf16.gmra.mrb[96].mxu0 %vm1452_vm1, %v1398_v16  ;;  %v1355_v26 = vmax.f32 %v1215_v20, 0.0 }
 0x21c   : > { %v1210_v25 = vadd.f32 %v3141_v18, %v1209_v24  ;;  %v1353_v28 = vmax.f32 %v1207_v22, 0.0 }
 0x21d   : > { %v1356_v27 = vmax.f32 %v1218_v42, 0.0 }
 0x21e   : > { %v1354_v29 = vmax.f32 %v1210_v25, 0.0 }
 0x21f   : > { %v1400_v30 = vpack.c.bf16 %v1356_v27, %v1355_v26 }
 0x220   : > { %v1399_v31 = vpack.c.bf16 %v1354_v29, %v1353_v28  ;;  %v2594_v32 = vpop.f32.mrb[40].mxu1 }
 0x221   : > { %v1231_v33 = vadd.f32 %v2594_v32, %v3141_v18  ;;  %v1222_v34 = vpop.f32.mrb[41].mxu1 }
 0x222   : > { %v1223_v35 = vadd.f32 %v3141_v18, %v1222_v34  ;;  %v2595_v36 = vpop.f32.mrb[42].mxu1  ;;  %2660 = vmatprep.mubr.msk.bf16.mxu0 %vm1452_vm1, %v1399_v31 }
 0x223   : > { %v1234_v37 = vadd.f32 %v2595_v36, %v3141_v18  ;;  %v1225_v38 = vpop.f32.mrb[43].mxu1  ;;  %2661 = vmatmul.mubr.msk.bf16.gmra.mrb[100].mxu0 %vm1452_vm1, %v1400_v30  ;;  %v1359_v40 = vmax.f32 %v1231_v33, 0.0 }
 0x224   : > { %v1226_v39 = vadd.f32 %v3141_v18, %v1225_v38  ;;  %v1357_v43 = vmax.f32 %v1223_v35, 0.0 }
 0x225   : > { %v1360_v41 = vmax.f32 %v1234_v37, 0.0 }
 0x226   : > { %v1358_v44 = vmax.f32 %v1226_v39, 0.0 }
 0x227   : > { %v1402_v45 = vpack.c.bf16 %v1360_v41, %v1359_v40 }
 0x228   : > { %v1401_v46 = vpack.c.bf16 %v1358_v44, %v1357_v43  ;;  %v2598_v47 = vpop.f32.mrb[44].mxu1 }
 0x229   : > { %v1247_v48 = vadd.f32 %v2598_v47, %v3141_v18  ;;  %v1238_v49 = vpop.f32.mrb[45].mxu1 }
 0x22a   : > { %v1239_v50 = vadd.f32 %v3141_v18, %v1238_v49  ;;  %v2599_v51 = vpop.f32.mrb[46].mxu1  ;;  %2664 = vmatprep.mubr.msk.bf16.mxu0 %vm1452_vm1, %v1401_v46 }
 0x22b   : > { %v1250_v52 = vadd.f32 %v2599_v51, %v3141_v18  ;;  %v1241_v53 = vpop.f32.mrb[47].mxu1  ;;  %2665 = vmatmul.mubr.msk.bf16.gmra.mrb[104].mxu0 %vm1452_vm1, %v1402_v45  ;;  %v1363_v55 = vmax.f32 %v1247_v48, 0.0 }
 0x22c   : > { %v1242_v54 = vadd.f32 %v3141_v18, %v1241_v53  ;;  %v1361_v57 = vmax.f32 %v1239_v50, 0.0 }
 0x22d   : > { %v1364_v56 = vmax.f32 %v1250_v52, 0.0 }
 0x22e   : > { %v1362_v58 = vmax.f32 %v1242_v54, 0.0  ;;  %v3242_v54 = vld [vmem:[%s3455_s7] sm:$0x1] }
 0x22f   : > { %v1404_v59 = vpack.c.bf16 %v1364_v56, %v1363_v55  ;;  %2448 = vmatprep.mubr.msk.bf16.mxu1 %vm475_vm0, %v3242_v54 }
 0x230   : > { %v1403_v60 = vpack.c.bf16 %v1362_v58, %v1361_v57  ;;  %v2602_v61 = vpop.f32.mrb[48].mxu1 }
 0x231   : > { %v1263_v62 = vadd.f32 %v2602_v61, %v3141_v18  ;;  %v1254_v63 = vpop.f32.mrb[49].mxu1 }
 0x232   : > { %v1255_v0 = vadd.f32 %v3141_v18, %v1254_v63  ;;  %v2603_v1 = vpop.f32.mrb[50].mxu1  ;;  %2668 = vmatprep.mubr.msk.bf16.mxu0 %vm1452_vm1, %v1403_v60 }
 0x233   : > { %v1266_v2 = vadd.f32 %v2603_v1, %v3141_v18  ;;  %v1257_v3 = vpop.f32.mrb[51].mxu1  ;;  %2669 = vmatmul.mubr.msk.bf16.gmra.mrb[108].mxu0 %vm1452_vm1, %v1404_v59  ;;  %v1367_v5 = vmax.f32 %v1263_v62, 0.0 }
 0x234   : > { %v1258_v4 = vadd.f32 %v3141_v18, %v1257_v3  ;;  %v1365_v7 = vmax.f32 %v1255_v0, 0.0 }
 0x235   : > { %v1368_v6 = vmax.f32 %v1266_v2, 0.0 }
 0x236   : > { %v1366_v8 = vmax.f32 %v1258_v4, 0.0 }
 0x237   : > { %v1406_v9 = vpack.c.bf16 %v1368_v6, %v1367_v5 }
 0x238   : > { %v1405_v10 = vpack.c.bf16 %v1366_v8, %v1365_v7  ;;  %v2606_v11 = vpop.f32.mrb[52].mxu1 }
 0x239   : > { %v1279_v12 = vadd.f32 %v2606_v11, %v3141_v18  ;;  %v1270_v13 = vpop.f32.mrb[53].mxu1 }
 0x23a   : > { %2672 = vmatprep.mubr.msk.bf16.mxu0 %vm1452_vm1, %v1405_v10  ;;  %v1271_v14 = vadd.f32 %v3141_v18, %v1270_v13  ;;  %v2607_v15 = vpop.f32.mrb[54].mxu1 }
 0x23b   : > { %2673 = vmatmul.mubr.msk.bf16.gmra.mrb[112].mxu0 %vm1452_vm1, %v1406_v9  ;;  %v1371_v16 = vmax.f32 %v1279_v12, 0.0  ;;  %v1282_v17 = vadd.f32 %v2607_v15, %v3141_v18  ;;  %v1273_v19 = vpop.f32.mrb[55].mxu1 }
 0x23c   : > { %v1369_v20 = vmax.f32 %v1271_v14, 0.0  ;;  %v1274_v21 = vadd.f32 %v3141_v18, %v1273_v19 }
 0x23d   : > { %v1372_v22 = vmax.f32 %v1282_v17, 0.0 }
 0x23e   : > { %v1370_v23 = vmax.f32 %v1274_v21, 0.0 }
 0x23f   : > { %v1408_v42 = vpack.c.bf16 %v1372_v22, %v1371_v16 }
 0x240   : > { %v1407_v24 = vpack.c.bf16 %v1370_v23, %v1369_v20  ;;  %v2610_v25 = vpop.f32.mrb[56].mxu1 }
 0x241   : > { %v1295_v26 = vadd.f32 %v2610_v25, %v3141_v18  ;;  %v1286_v27 = vpop.f32.mrb[57].mxu1 }
 0x242   : > { %2676 = vmatprep.mubr.msk.bf16.mxu0 %vm1452_vm1, %v1407_v24  ;;  %v1287_v28 = vadd.f32 %v3141_v18, %v1286_v27  ;;  %v2611_v29 = vpop.f32.mrb[58].mxu1 }
 0x243   : > { %2677 = vmatmul.mubr.msk.bf16.gmra.mrb[116].mxu0 %vm1452_vm1, %v1408_v42  ;;  %v1375_v30 = vmax.f32 %v1295_v26, 0.0  ;;  %v1298_v31 = vadd.f32 %v2611_v29, %v3141_v18  ;;  %v1289_v32 = vpop.f32.mrb[59].mxu1 }
 0x244   : > { %v1373_v33 = vmax.f32 %v1287_v28, 0.0  ;;  %v1290_v34 = vadd.f32 %v3141_v18, %v1289_v32 }
 0x245   : > { %v1376_v35 = vmax.f32 %v1298_v31, 0.0 }
 0x246   : > { %v1374_v36 = vmax.f32 %v1290_v34, 0.0 }
 0x247   : > { %v1410_v37 = vpack.c.bf16 %v1376_v35, %v1375_v30 }
 0x248   : > { %v1409_v38 = vpack.c.bf16 %v1374_v36, %v1373_v33  ;;  %v2614_v39 = vpop.f32.mrb[60].mxu1 }
 0x249   : > { %v1311_v40 = vadd.f32 %v2614_v39, %v3141_v18  ;;  %v1302_v41 = vpop.f32.mrb[61].mxu1 }
 0x24a   : > { %2680 = vmatprep.mubr.msk.bf16.mxu0 %vm1452_vm1, %v1409_v38  ;;  %v1303_v43 = vadd.f32 %v3141_v18, %v1302_v41  ;;  %v2615_v44 = vpop.f32.mrb[62].mxu1 }
 0x24b   : > { %2681 = vmatmul.mubr.msk.bf16.gmra.mrb[120].mxu0 %vm1452_vm1, %v1410_v37  ;;  %v1379_v45 = vmax.f32 %v1311_v40, 0.0  ;;  %v1314_v46 = vadd.f32 %v2615_v44, %v3141_v18  ;;  %v1305_v47 = vpop.f32.mrb[63].mxu1 }
 0x24c   : > { %v1377_v48 = vmax.f32 %v1303_v43, 0.0  ;;  %v1306_v49 = vadd.f32 %v3141_v18, %v1305_v47  ;;  %v3249_v18 = vld [vmem:[%s3454_s6] ss:$0 sm:$0xff] }
 0x24d   : > { %v1380_v50 = vmax.f32 %v1314_v46, 0.0 }
 0x24e   : > { %v1378_v51 = vmax.f32 %v1306_v49, 0.0 }
 0x24f   : > { %v1412_v52 = vpack.c.bf16 %v1380_v50, %v1379_v45 }
 0x250   : > { %v1411_v53 = vpack.c.bf16 %v1378_v51, %v1377_v48 }
 0x252   : > { %2684 = vmatprep.mubr.msk.bf16.mxu0 %vm1452_vm1, %v1411_v53 }
 0x253   : > { %2685 = vmatmul.mubr.msk.bf16.gmra.mrb[124].mxu0 %vm1452_vm1, %v1412_v52 }
 0x2ae   : > { %v2626_v55 = vpop.f32.mrb[64].mxu0 }
 0x2af   : > { %v1592_v56 = vadd.f32 %v2626_v55, %v3249_v18  ;;  %v1583_v57 = vpop.f32.mrb[65].mxu0 }
 0x2b0   : > { %v1584_v58 = vadd.f32 %v3249_v18, %v1583_v57  ;;  %v2627_v59 = vpop.f32.mrb[66].mxu0 }
 0x2b1   : > { %v1595_v60 = vadd.f32 %v2627_v59, %v3249_v18  ;;  %v1586_v61 = vpop.f32.mrb[67].mxu0  ;;  %v1840_v63 = vmax.f32 %v1592_v56, 0.0 }
 0x2b2   : > { %v1587_v62 = vadd.f32 %v3249_v18, %v1586_v61  ;;  %v1838_v1 = vmax.f32 %v1584_v58, 0.0 }
 0x2b3   : > { %v1841_v0 = vmax.f32 %v1595_v60, 0.0 }
 0x2b4   : > { %v1839_v2 = vmax.f32 %v1587_v62, 0.0 }
 0x2b5   : > { %v3255_v3 = vpack.c.bf16 %v1841_v0, %v1840_v63 }
 0x2b6   : > { %v1903_v4 = vpack.c.bf16 %v1839_v2, %v1838_v1  ;;  %v2630_v5 = vpop.f32.mrb[68].mxu0 }
 0x2b7   : > { %v1608_v6 = vadd.f32 %v2630_v5, %v3249_v18  ;;  %v1599_v7 = vpop.f32.mrb[69].mxu0 }
 0x2b8   : > { %v1600_v8 = vadd.f32 %v3249_v18, %v1599_v7  ;;  %v2631_v9 = vpop.f32.mrb[70].mxu0  ;;  %v1941_v2 = vsel %vm475_vm0, %v1903_v4, 0 }
 0x2b9   : > { %v1611_v10 = vadd.f32 %v2631_v9, %v3249_v18  ;;  %v1602_v11 = vpop.f32.mrb[71].mxu0  ;;  %v1844_v13 = vmax.f32 %v1608_v6, 0.0 }
 0x2ba   : > { %v1603_v12 = vadd.f32 %v3249_v18, %v1602_v11  ;;  %v1842_v15 = vmax.f32 %v1600_v8, 0.0 }
 0x2bb   : > { %v1845_v14 = vmax.f32 %v1611_v10, 0.0 }
 0x2bc   : > { %v1843_v16 = vmax.f32 %v1603_v12, 0.0 }
 0x2bd   : > { %v3261_v17 = vpack.c.bf16 %v1845_v14, %v1844_v13 }
 0x2be   : > { %v3263_v19 = vpack.c.bf16 %v1843_v16, %v1842_v15  ;;  %v2634_v20 = vpop.f32.mrb[72].mxu0 }
 0x2bf   : > { %v1624_v21 = vadd.f32 %v2634_v20, %v3249_v18  ;;  %v1615_v22 = vpop.f32.mrb[73].mxu0 }
 0x2c0   : > { %v1616_v23 = vadd.f32 %v3249_v18, %v1615_v22  ;;  %v2635_v42 = vpop.f32.mrb[74].mxu0 }
 0x2c1   : > { %v1627_v24 = vadd.f32 %v2635_v42, %v3249_v18  ;;  %v1618_v25 = vpop.f32.mrb[75].mxu0  ;;  %v1848_v27 = vmax.f32 %v1624_v21, 0.0  ;;  %v1944_v21 = vsel %vm475_vm0, %v3255_v3, 0 }
 0x2c2   : > { %v1619_v26 = vadd.f32 %v3249_v18, %v1618_v25  ;;  %v1846_v29 = vmax.f32 %v1616_v23, 0.0 }
 0x2c3   : > { %v1849_v28 = vmax.f32 %v1627_v24, 0.0 }
 0x2c4   : > { %v1847_v30 = vmax.f32 %v1619_v26, 0.0 }
 0x2c5   : > { %v3269_v31 = vpack.c.bf16 %v1849_v28, %v1848_v27 }
 0x2c6   : > { %v3271_v32 = vpack.c.bf16 %v1847_v30, %v1846_v29  ;;  %v2638_v33 = vpop.f32.mrb[76].mxu0 }
 0x2c7   : > { %v1640_v34 = vadd.f32 %v2638_v33, %v3249_v18  ;;  %v1631_v35 = vpop.f32.mrb[77].mxu0 }
 0x2c8   : > { %v1632_v36 = vadd.f32 %v3249_v18, %v1631_v35  ;;  %v2639_v37 = vpop.f32.mrb[78].mxu0 }
 0x2c9   : > { %v1643_v38 = vadd.f32 %v2639_v37, %v3249_v18  ;;  %v1634_v39 = vpop.f32.mrb[79].mxu0  ;;  %v1852_v41 = vmax.f32 %v1640_v34, 0.0 }
 0x2ca   : > { %v1635_v40 = vadd.f32 %v3249_v18, %v1634_v39  ;;  %v1850_v44 = vmax.f32 %v1632_v36, 0.0  ;;  %v1947_v36 = vsel %vm475_vm0, %v3263_v19, 0 }
 0x2cb   : > { %v1853_v43 = vmax.f32 %v1643_v38, 0.0 }
 0x2cc   : > { %v1851_v45 = vmax.f32 %v1635_v40, 0.0 }
 0x2cd   : > { %v3277_v46 = vpack.c.bf16 %v1853_v43, %v1852_v41 }
 0x2ce   : > { %v3279_v47 = vpack.c.bf16 %v1851_v45, %v1850_v44  ;;  %v2642_v48 = vpop.f32.mrb[80].mxu0 }
 0x2cf   : > { %v1656_v49 = vadd.f32 %v2642_v48, %v3249_v18  ;;  %v1647_v50 = vpop.f32.mrb[81].mxu0 }
 0x2d0   : > { %v1648_v51 = vadd.f32 %v3249_v18, %v1647_v50  ;;  %v2643_v52 = vpop.f32.mrb[82].mxu0 }
 0x2d1   : > { %v1659_v53 = vadd.f32 %v2643_v52, %v3249_v18  ;;  %v1650_v55 = vpop.f32.mrb[83].mxu0  ;;  %v1856_v57 = vmax.f32 %v1656_v49, 0.0 }
 0x2d2   : > { %v1651_v56 = vadd.f32 %v3249_v18, %v1650_v55  ;;  %v1854_v59 = vmax.f32 %v1648_v51, 0.0 }
 0x2d3   : > { %v1857_v58 = vmax.f32 %v1659_v53, 0.0  ;;  %v1950_v53 = vsel %vm475_vm0, %v3261_v17, 0 }
 0x2d4   : > { %v1855_v60 = vmax.f32 %v1651_v56, 0.0 }
 0x2d5   : > { %v1912_v61 = vpack.c.bf16 %v1857_v58, %v1856_v57 }
 0x2d6   : > { %v1911_v62 = vpack.c.bf16 %v1855_v60, %v1854_v59  ;;  %v2646_v63 = vpop.f32.mrb[84].mxu0 }
 0x2d7   : > { %v1672_v0 = vadd.f32 %v2646_v63, %v3249_v18  ;;  %v1663_v1 = vpop.f32.mrb[85].mxu0 }
 0x2d8   : > { %2688 = vmatprep.subr.msk.bf16.mxu1 %vm475_vm0, %v1911_v62  ;;  %v1664_v5 = vadd.f32 %v3249_v18, %v1663_v1  ;;  %v2647_v6 = vpop.f32.mrb[86].mxu0 }
 0x2d9   : > { %2433 = vmatpush3.bf16.xpose.msra.mxu1 %v1941_v2  ;;  %v1675_v7 = vadd.f32 %v2647_v6, %v3249_v18  ;;  %v1666_v8 = vpop.f32.mrb[87].mxu0  ;;  %v1860_v10 = vmax.f32 %v1672_v0, 0.0  ;;  %v1953_v6 = vsel %vm475_vm0, %v3271_v32, 0 }
 0x2da   : > { %2689 = vmatprep.subr.msk.bf16.mxu1 %vm475_vm0, %v1912_v61  ;;  %v1667_v9 = vadd.f32 %v3249_v18, %v1666_v8  ;;  %v1858_v12 = vmax.f32 %v1664_v5, 0.0 }
 0x2db   : > { %v1861_v11 = vmax.f32 %v1675_v7, 0.0 }
 0x2dc   : > { %v1859_v13 = vmax.f32 %v1667_v9, 0.0 }
 0x2dd   : > { %v1914_v14 = vpack.c.bf16 %v1861_v11, %v1860_v10 }
 0x2de   : > { %v1913_v15 = vpack.c.bf16 %v1859_v13, %v1858_v12  ;;  %v2650_v16 = vpop.f32.mrb[88].mxu0 }
 0x2df   : > { %v1688_v4 = vadd.f32 %v2650_v16, %v3249_v18  ;;  %v1679_v20 = vpop.f32.mrb[89].mxu0 }
 0x2e0   : > { %v1680_v22 = vadd.f32 %v3249_v18, %v1679_v20  ;;  %v2651_v23 = vpop.f32.mrb[90].mxu0 }
 0x2e1   : > { %2435 = vmatpush3.bf16.xpose.msra.mxu1 %v1944_v21  ;;  %v1691_v42 = vadd.f32 %v2651_v23, %v3249_v18  ;;  %v1682_v24 = vpop.f32.mrb[91].mxu0  ;;  %v1864_v26 = vmax.f32 %v1688_v4, 0.0 }
 0x2e2   : > { %2690 = vmatprep.subr.msk.bf16.mxu1 %vm475_vm0, %v1913_v15  ;;  %v1683_v25 = vadd.f32 %v3249_v18, %v1682_v24  ;;  %v1862_v28 = vmax.f32 %v1680_v22, 0.0  ;;  %v1956_v22 = vsel %vm475_vm0, %v3269_v31, 0 }
 0x2e3   : > { %v1865_v27 = vmax.f32 %v1691_v42, 0.0 }
 0x2e4   : > { %v1863_v29 = vmax.f32 %v1683_v25, 0.0 }
 0x2e5   : > { %v1916_v30 = vpack.c.bf16 %v1865_v27, %v1864_v26 }
 0x2e6   : > { %v1915_v33 = vpack.c.bf16 %v1863_v29, %v1862_v28  ;;  %v2654_v34 = vpop.f32.mrb[92].mxu0 }
 0x2e7   : > { %v1704_v3 = vadd.f32 %v2654_v34, %v3249_v18  ;;  %v1695_v35 = vpop.f32.mrb[93].mxu0 }
 0x2e8   : > { %v1696_v37 = vadd.f32 %v3249_v18, %v1695_v35  ;;  %v2655_v38 = vpop.f32.mrb[94].mxu0 }
 0x2e9   : > { %2437 = vmatpush3.bf16.xpose.msra.mxu1 %v1947_v36  ;;  %v1707_v39 = vadd.f32 %v2655_v38, %v3249_v18  ;;  %v1698_v40 = vpop.f32.mrb[95].mxu0  ;;  %v1868_v43 = vmax.f32 %v1704_v3, 0.0  ;;  %v1959_v36 = vsel %vm475_vm0, %v3279_v47, 0 }
 0x2ea   : > { %2691 = vmatprep.subr.msk.bf16.mxu1 %vm475_vm0, %v1914_v14  ;;  %v1699_v41 = vadd.f32 %v3249_v18, %v1698_v40  ;;  %v1866_v45 = vmax.f32 %v1696_v37, 0.0 }
 0x2eb   : > { %v1869_v44 = vmax.f32 %v1707_v39, 0.0 }
 0x2ec   : > { %v1867_v48 = vmax.f32 %v1699_v41, 0.0 }
 0x2ed   : > { %v3306_v49 = vpack.c.bf16 %v1869_v44, %v1868_v43 }
 0x2ee   : > { %v1917_v50 = vpack.c.bf16 %v1867_v48, %v1866_v45  ;;  %v2658_v51 = vpop.f32.mrb[96].mxu0 }
 0x2ef   : > { %v1720_v19 = vadd.f32 %v2658_v51, %v3249_v18  ;;  %v1711_v52 = vpop.f32.mrb[97].mxu0 }
 0x2f0   : > { %v1712_v55 = vadd.f32 %v3249_v18, %v1711_v52  ;;  %v2659_v56 = vpop.f32.mrb[98].mxu0 }
 0x2f1   : > { %2439 = vmatpush3.bf16.xpose.msra.mxu1 %v1950_v53  ;;  %v1723_v57 = vadd.f32 %v2659_v56, %v3249_v18  ;;  %v1714_v58 = vpop.f32.mrb[99].mxu0  ;;  %v1872_v60 = vmax.f32 %v1720_v19, 0.0  ;;  %v1962_v56 = vsel %vm475_vm0, %v3277_v46, 0 }
 0x2f2   : > { %2692 = vmatprep.subr.msk.bf16.mxu1 %vm475_vm0, %v1915_v33  ;;  %v1715_v59 = vadd.f32 %v3249_v18, %v1714_v58  ;;  %v1870_v62 = vmax.f32 %v1712_v55, 0.0 }
 0x2f3   : > { %v1873_v61 = vmax.f32 %v1723_v57, 0.0 }
 0x2f4   : > { %v1871_v63 = vmax.f32 %v1715_v59, 0.0 }
 0x2f5   : > { %v3315_v0 = vpack.c.bf16 %v1873_v61, %v1872_v60 }
 0x2f6   : > { %v3317_v1 = vpack.c.bf16 %v1871_v63, %v1870_v62  ;;  %v2662_v17 = vpop.f32.mrb[100].mxu0 }
 0x2f7   : > { %v1736_v2 = vadd.f32 %v2662_v17, %v3249_v18  ;;  %v1727_v5 = vpop.f32.mrb[101].mxu0 }
 0x2f8   : > { %v1728_v7 = vadd.f32 %v3249_v18, %v1727_v5  ;;  %v2663_v8 = vpop.f32.mrb[102].mxu0  ;;  %v1989_v46 = vsel %vm475_vm0, %v3317_v1, 0 }
 0x2f9   : > { %2441 = vmatpush3.bf16.xpose.msra.mxu1 %v1953_v6  ;;  %v1739_v9 = vadd.f32 %v2663_v8, %v3249_v18  ;;  %v1730_v10 = vpop.f32.mrb[103].mxu0  ;;  %v1876_v12 = vmax.f32 %v1736_v2, 0.0 }
 0x2fa   : > { %2693 = vmatprep.subr.msk.bf16.mxu1 %vm475_vm0, %v1916_v30  ;;  %v1731_v11 = vadd.f32 %v3249_v18, %v1730_v10  ;;  %v1874_v14 = vmax.f32 %v1728_v7, 0.0 }
 0x2fb   : > { %v1877_v13 = vmax.f32 %v1739_v9, 0.0 }
 0x2fc   : > { %v1875_v15 = vmax.f32 %v1731_v11, 0.0 }
 0x2fd   : > { %v3326_v16 = vpack.c.bf16 %v1877_v13, %v1876_v12 }
 0x2fe   : > { %v3328_v4 = vpack.c.bf16 %v1875_v15, %v1874_v14  ;;  %v2666_v32 = vpop.f32.mrb[104].mxu0 }
 0x2ff   : > { %v1752_v20 = vadd.f32 %v2666_v32, %v3249_v18  ;;  %v1743_v21 = vpop.f32.mrb[105].mxu0 }
 0x300   : > { %v1744_v23 = vadd.f32 %v3249_v18, %v1743_v21  ;;  %v2667_v42 = vpop.f32.mrb[106].mxu0 }
 0x301   : > { %2443 = vmatpush3.bf16.xpose.msra.mxu1 %v1956_v22  ;;  %v1755_v24 = vadd.f32 %v2667_v42, %v3249_v18  ;;  %v1746_v25 = vpop.f32.mrb[107].mxu0  ;;  %v1880_v27 = vmax.f32 %v1752_v20, 0.0 }
 0x302   : > { %2694 = vmatprep.subr.msk.bf16.mxu1 %vm475_vm0, %v1917_v50  ;;  %v1747_v26 = vadd.f32 %v3249_v18, %v1746_v25  ;;  %v1878_v29 = vmax.f32 %v1744_v23, 0.0  ;;  %v1992_v23 = vsel %vm475_vm0, %v3315_v0, 0 }
 0x303   : > { %v1881_v28 = vmax.f32 %v1755_v24, 0.0 }
 0x304   : > { %v1879_v30 = vmax.f32 %v1747_v26, 0.0 }
 0x305   : > { %v3337_v33 = vpack.c.bf16 %v1881_v28, %v1880_v27 }
 0x306   : > { %v3339_v34 = vpack.c.bf16 %v1879_v30, %v1878_v29  ;;  %v2670_v31 = vpop.f32.mrb[108].mxu0 }
 0x307   : > { %v1768_v3 = vadd.f32 %v2670_v31, %v3249_v18  ;;  %v1759_v35 = vpop.f32.mrb[109].mxu0 }
 0x308   : > { %v1760_v37 = vadd.f32 %v3249_v18, %v1759_v35  ;;  %v2671_v38 = vpop.f32.mrb[110].mxu0 }
 0x309   : > { %2445 = vmatpush3.bf16.xpose.msra.mxu1 %v1959_v36  ;;  %v1771_v39 = vadd.f32 %v2671_v38, %v3249_v18  ;;  %v1762_v40 = vpop.f32.mrb[111].mxu0  ;;  %v1884_v43 = vmax.f32 %v1768_v3, 0.0  ;;  %v1995_v38 = vsel %vm475_vm0, %v3328_v4, 0  ;;  %v1998_v4 = vsel %vm475_vm0, %v3326_v16, 0 }
 0x30a   : > { %v1763_v41 = vadd.f32 %v3249_v18, %v1762_v40  ;;  %2695 = vmatprep.subr.msk.bf16.mxu1 %vm475_vm0, %v3306_v49  ;;  %v1882_v45 = vmax.f32 %v1760_v37, 0.0 }
 0x30b   : > { %v1885_v44 = vmax.f32 %v1771_v39, 0.0 }
 0x30c   : > { %v1883_v48 = vmax.f32 %v1763_v41, 0.0 }
 0x30d   : > { %v3349_v50 = vpack.c.bf16 %v1885_v44, %v1884_v43 }
 0x30e   : > { %v3351_v51 = vpack.c.bf16 %v1883_v48, %v1882_v45  ;;  %v2674_v47 = vpop.f32.mrb[112].mxu0 }
 0x30f   : > { %v1784_v19 = vadd.f32 %v2674_v47, %v3249_v18  ;;  %v1775_v52 = vpop.f32.mrb[113].mxu0  ;;  %v2010_v16 = vsel %vm475_vm0, %v3349_v50, 0 }
 0x310   : > { %v1776_v53 = vadd.f32 %v3249_v18, %v1775_v52  ;;  %v2675_v55 = vpop.f32.mrb[114].mxu0 }
 0x311   : > { %v1787_v49 = vadd.f32 %v2675_v55, %v3249_v18  ;;  %v1778_v57 = vpop.f32.mrb[115].mxu0  ;;  %2447 = vmatpush3.bf16.xpose.msra.mxu1 %v1962_v56  ;;  %v1888_v59 = vmax.f32 %v1784_v19, 0.0  ;;  %v2001_v55 = vsel %vm475_vm0, %v3339_v34, 0  ;;  %v2004_v56 = vsel %vm475_vm0, %v3337_v33, 0 }
 0x312   : > { %v1779_v58 = vadd.f32 %v3249_v18, %v1778_v57  ;;  %v1886_v61 = vmax.f32 %v1776_v53, 0.0  ;;  %v1936_v34 = vstv %s1935_s18 }
 0x313   : > { %v1889_v60 = vmax.f32 %v1787_v49, 0.0 }
 0x314   : > { %v1887_v62 = vmax.f32 %v1779_v58, 0.0 }
 0x315   : > { %v1928_v63 = vpack.c.bf16 %v1889_v60, %v1888_v59 }
 0x316   : > { %v1927_v17 = vpack.c.bf16 %v1887_v62, %v1886_v61  ;;  %v2678_v2 = vpop.f32.mrb[116].mxu0  ;;  %v2822_v61 = vmov 1966171168  }
 0x317   : > { %v1800_v5 = vadd.f32 %v2678_v2, %v3249_v18  ;;  %v1791_v6 = vpop.f32.mrb[117].mxu0  ;;  %v2125_v62 = vunpack.c.l.s4 %v2822_v61 }
 0x318   : > { %2696 = vmatprep.subr.msk.bf16.mxu1 %vm475_vm0, %v1927_v17  ;;  %2449 = vmatmul.mubr.msk.bf16.vlgmr.msra.gmra.mrb[64].mxu1 %vm475_vm0, %v3242_v54  ;;  %v1792_v7 = vadd.f32 %v3249_v18, %v1791_v6  ;;  %v2679_v8 = vpop.f32.mrb[118].mxu0 }
 0x319   : > { %2451 = vmatpush3.bf16.xpose.msra.mxu1 %v1989_v46  ;;  %v1803_v9 = vadd.f32 %v2679_v8, %v3249_v18  ;;  %v1794_v10 = vpop.f32.mrb[119].mxu0  ;;  %2466 = vmatprep.mubr.msk.bf16.mxu1 %vm475_vm0, %v3242_v54  ;;  %v1892_v12 = vmax.f32 %v1800_v5, 0.0  ;;  %v2126_v17 = vunpack.c.0.s8 %v2125_v62 }
 0x31a   : > { %2697 = vmatprep.subr.msk.bf16.mxu1 %vm475_vm0, %v1928_v63  ;;  %v1795_v11 = vadd.f32 %v3249_v18, %v1794_v10  ;;  %v1890_v14 = vmax.f32 %v1792_v7, 0.0  ;;  %v2127_v63 = vlaneseq }
 0x31b   : > { %v1893_v13 = vmax.f32 %v1803_v9, 0.0 }
 0x31c   : > { %v1891_v15 = vmax.f32 %v1795_v11, 0.0  ;;  %v2128_v2 = vshrl.u32 %v2127_v63, 7  ;;  %vm2149_vm2 = vcmp.lt.s32.totalorder %v2127_v63, 512 }
 0x31d   : > { %v1930_v32 = vpack.c.bf16 %v1893_v13, %v1892_v12 }
 0x31e   : > { %v1929_v1 = vpack.c.bf16 %v1891_v15, %v1890_v14  ;;  %v2682_v20 = vpop.f32.mrb[120].mxu0 }
 0x31f   : > { %v1816_v21 = vadd.f32 %v2682_v20, %v3249_v18  ;;  %v1807_v22 = vpop.f32.mrb[121].mxu0 }
 0x320   : > { %v1808_v42 = vadd.f32 %v3249_v18, %v1807_v22  ;;  %v2683_v24 = vpop.f32.mrb[122].mxu0 }
 0x321   : > { %2453 = vmatpush3.bf16.xpose.msra.mxu1 %v1992_v23  ;;  %v1896_v25 = vmax.f32 %v1816_v21, 0.0  ;;  %v1819_v26 = vadd.f32 %v2683_v24, %v3249_v18  ;;  %v1810_v27 = vpop.f32.mrb[123].mxu0 }
 0x322   : > { %2698 = vmatprep.subr.msk.bf16.mxu1 %vm475_vm0, %v1929_v1  ;;  %v1894_v28 = vmax.f32 %v1808_v42, 0.0  ;;  %v1811_v29 = vadd.f32 %v3249_v18, %v1810_v27 }
 0x323   : > { %v1897_v30 = vmax.f32 %v1819_v26, 0.0 }
 0x324   : > { %v1895_v31 = vmax.f32 %v1811_v29, 0.0 }
 0x325   : > { %v1932_v3 = vpack.c.bf16 %v1897_v30, %v1896_v25 }
 0x326   : > { %v1931_v35 = vpack.c.bf16 %v1895_v31, %v1894_v28  ;;  %v2686_v36 = vpop.f32.mrb[124].mxu0 }
 0x327   : > { %v1832_v0 = vadd.f32 %v2686_v36, %v3249_v18  ;;  %v1823_v37 = vpop.f32.mrb[125].mxu0 }
 0x328   : > { %v1824_v39 = vadd.f32 %v3249_v18, %v1823_v37  ;;  %v2687_v40 = vpop.f32.mrb[126].mxu0 }
 0x329   : > { %2455 = vmatpush3.bf16.xpose.msra.mxu1 %v1995_v38  ;;  %v1900_v41 = vmax.f32 %v1832_v0, 0.0  ;;  %v1835_v43 = vadd.f32 %v2687_v40, %v3249_v18  ;;  %v1826_v44 = vpop.f32.mrb[127].mxu0 }
 0x32a   : > { %2699 = vmatprep.subr.msk.bf16.mxu1 %vm475_vm0, %v1930_v32  ;;  %v1898_v45 = vmax.f32 %v1824_v39, 0.0  ;;  %v1827_v48 = vadd.f32 %v3249_v18, %v1826_v44  ;;  %v2007_v18 = vsel %vm475_vm0, %v3351_v51, 0 }
 0x32b   : > { %v1901_v47 = vmax.f32 %v1835_v43, 0.0 }
 0x32c   : > { %v1899_v19 = vmax.f32 %v1827_v48, 0.0 }
 0x32d   : > { %v1934_v52 = vpack.c.bf16 %v1901_v47, %v1900_v41 }
 0x32e   : > { %v1933_v53 = vpack.c.bf16 %v1899_v19, %v1898_v45 }
 0x331   : > { %2457 = vmatpush3.bf16.xpose.msra.mxu1 %v1998_v4 }
 0x332   : > { %2700 = vmatprep.subr.msk.bf16.mxu1 %vm475_vm0, %v1931_v35 }
 0x339   : > { %2459 = vmatpush3.bf16.xpose.msra.mxu1 %v2001_v55 }
 0x33a   : > { %2701 = vmatprep.subr.msk.bf16.mxu1 %vm475_vm0, %v1932_v3 }
 0x341   : > { %2461 = vmatpush3.bf16.xpose.msra.mxu1 %v2004_v56 }
 0x342   : > { %2702 = vmatprep.subr.msk.bf16.mxu1 %vm475_vm0, %v1933_v53 }
 0x349   : > { %2463 = vmatpush3.bf16.xpose.msra.mxu1 %v2007_v18 }
 0x34a   : > { %2703 = vmatprep.subr.msk.bf16.mxu1 %vm475_vm0, %v1934_v52 }
 0x351   : > { %2465 = vmatpush3.bf16.xpose.msra.mxu1 %v2010_v16 }
 0x358   : > { %2467 = vmatmul.mubr.msk.bf16.vlgmr.msra.gmra.mrb[68].mxu1 %vm475_vm0, %v3242_v54  ;;  %v2129_v54 = vsub.s32 %v2126_v17, %v2128_v2 }
 0x3eb   : > { %v2070_v33 = vpop.f32.mrb[64].mxu1 }
 0x3ec   : > { %v2071_v49 = vadd.f32 %v2070_v33, %v1936_v34  ;;  %v2072_v57 = vpop.f32.mrb[65].mxu1 }
 0x3ed   : > { %v2073_v58 = vadd.f32 %v2072_v57, %v1936_v34  ;;  %v2074_v59 = vpop.f32.mrb[66].mxu1 }
 0x3ee   : > { %v2075_v60 = vpop.f32.mrb[67].mxu1 }
 0x3ef   : > { %v2122_v51 = vcombine.low %v2071_v49, %v2073_v58 }
 0x3f1   : > { %v2130_v10 = vrot.slane %v2122_v51, %v2129_v54 }
 0x42b   : > { %v2111_v50 = vpop.f32.mrb[68].mxu1 }
 0x42c   : > { %v2112_v5 = vadd.f32 %v2111_v50, %v1936_v34  ;;  %v2113_v6 = vpop.f32.mrb[69].mxu1 }
 0x42d   : > { %v2114_v46 = vadd.f32 %v2113_v6, %v1936_v34  ;;  %v2115_v7 = vpop.f32.mrb[70].mxu1 }
 0x42e   : > { %v2116_v8 = vpop.f32.mrb[71].mxu1 }
 0x42f   : > { %v2123_v9 = vcombine.low %v2112_v5, %v2114_v46 }
 0x431   : > { %v2137_v11 = vrot.slane %v2123_v9, %v2129_v54 }
 0x433   : > { %v2138_v12 = vcombine.low %v2130_v10, %v2137_v11 }
 0x435   : > { %v2145_v13 = vrot.slane %v2138_v12, %v2129_v54 }
 0x437   : > { %2151 = vst.msk [vmem:[%s339_s28] sm:$0xf] %vm2149_vm2, %v2145_v13 }
 0x438   : > { %2771 = shalt.err (!%p2768_p3)
}
 0x439   : > { %s2772_s24 = scalar_lea.hbm %s3406_s8, 64  ;;  %s2776_s27 = scalar_lea.hbm %s3457_s9, 128 }
 0x43a   : > { %p2773_p4 = scmp.ne.s32.totalorder %s3406_s8, %s2772_s24  ;;  %p2777_p9 = scmp.lt.u32.totalorder %s3406_s8, %s3457_s9 }
 0x43b   : > { %p2778_p10 = scmp.lt.u32.totalorder %s2776_s27, %s2772_s24  ;;  %p2780_p12 = scmp.lt.u32.totalorder %s2772_s24, %s3406_s8 }
 0x43c   : > { %p2774_p7 = pnand %p2773_p4, %p2912_p5 }
 0x43d   : > { %p2779_p11 = por %p2778_p10, %p2777_p9 }
 0x43e   : > { %p2775_p8 = pneg %p2774_p7 }
 0x43f   : > { %p2781_p13 = por %p2780_p12, %p2779_p11 }
 0x441   : > { %p2782_p0 = pnand %p2781_p13, %p2775_p8 }
 0x443   : > { %2785 = shalt.err (!%p2782_p0)
}
 0x444   : > { %2704 = dma.vmem_to_hbm [thread:$0]  (%p2912_p5), %s3408_s29, 64, %s3406_s8, %s2153_s15  }
 0x445 PF: > { %p2710_p1 = scmp.ge.s32.totalorder %s2820_s14, 2  ;;  %s2179_s10 = sand.u32 1, %s2808_s11  }
 0x446   : > { %s2180_s17 = scalar_lea.sflag [#allocation4], %s2179_s10 }
 0x447   : > { %p2707_p2 = pnand %p2710_p1, %p2916_p6 }
 0x449   : > { %2803 = dma.done.wait (!%p2707_p2), %s2180_s17, 64  }
 0x44a   : > { %2805 = vsyncadd (!%p2707_p2), %s2180_s17, 4294967232  ;;  %p20_p3 = scmp.ge.s32.totalorder %s2900_s16, 4   ;;  %s3460_s11 = smov %s2812_s12 }
 0x44b   : > { %s3461_s12 = smov %s2816_s13  ;;  %s3462_s13 = smov %s2910_s19 }
 0x44c   : > { %s3463_s14 = smov %s2900_s16  ;;  %22 = sbr.rel (!%p20_p3) target bundleno = 5 (0x5), region = 91 }
 0x453   :  { %2185 = vsyncpa [#allocation4], 1 }
 0x454   :  { %2187 = vsyncpa [#allocation4 + $0x1], 1 }

</bundles_post_ra>
